<compile_context>
chip_gen: v6e
topology: v6e:2x2x1
jax: 0.10.0
libtpu: 0.0.40
codegen_flags: <defaults>
</compile_context>

<pallas_src>
import math
import numpy as np
import jax
import jax.numpy as jnp
from jax.experimental import pallas as pl
from jax.experimental.pallas import tpu as pltpu


def lstm_kernel(nact_ref,                      # scalar prefetch: # active time chunks
                lens_ref, x_ref, wih_ref, whh_ref, b_ref, wf_ref, bf_ref,
                out_ref, h_ref, c_ref):
    ci = pl.program_id(1)                      # time-chunk index (recurrent axis)
    n_active = nact_ref[0]                     # chunks containing any valid step

    tc, bt, d = x_ref.shape                    # time-major chunk
    hd = h_ref.shape[1]

    @pl.when(ci == 0)
    def _():
        h_ref[...] = jnp.zeros_like(h_ref)
        c_ref[...] = jnp.zeros_like(c_ref)

    @pl.when(ci < n_active)                    # skip chunks past max(lens)
    def _():
        # Chunk-wide input projection: one MXU matmul (M = Tc*Bt), bias folded
        # in once -- hoisted off the recurrent critical path.
        x2d = x_ref[...].reshape(tc * bt, d)
        xg = (jnp.dot(x2d, wih_ref[...],
                      preferred_element_type=jnp.float32)
              + b_ref[...]).reshape(tc, bt, 4 * hd)       # [Tc, Bt, 4H] f32

        lens_col = lens_ref[...]               # [Bt, 1] int32, loaded once/chunk
        whh = whh_ref[...]                     # [H, 4H], loaded once/chunk
        t0 = ci * tc

        h = h_ref[...]                         # [Bt, H] f32 state
        c = c_ref[...]
        # Tc is a small compile-time constant -> statically unrolled recurrence;
        # xg[tt] is a contiguous [Bt, 4H] slab (leading-axis static slice).
        for tt in range(tc):
            gates = xg[tt] + jnp.dot(h, whh,
                                     preferred_element_type=jnp.float32)
            # Two full-width EUP activations instead of four sub-lane ones.
            sg = jax.nn.sigmoid(gates)
            tg = jnp.tanh(gates)
            i_g = sg[:, 0 * hd:1 * hd]
            f_g = sg[:, 1 * hd:2 * hd]
            g_g = tg[:, 2 * hd:3 * hd]
            o_g = sg[:, 3 * hd:4 * hd]
            c_new = f_g * c + i_g * g_g
            h_new = o_g * jnp.tanh(c_new)
            # Only advance state while t < lens[b]; afterwards h holds h_{lens-1}.
            mask = (t0 + tt) < lens_col        # [Bt, 1] bool
            h = jnp.where(mask, h_new, h)
            c = jnp.where(mask, c_new, c)
        h_ref[...] = h
        c_ref[...] = c

    # Fused final Linear + Sigmoid on the last *active* chunk (lens >= 1 always,
    # so n_active >= 1 and the output is always written exactly once per tile).
    @pl.when(ci == n_active - 1)
    def _():
        logits = (jnp.dot(h_ref[...], wf_ref[...],
                          preferred_element_type=jnp.float32) + bf_ref[...])
        out_ref[...] = jax.nn.sigmoid(logits)


def standard_lstm_forward(seq, lens, params, *, tc=16, bt=8):
    """seq: [B, T, D] float32 (batch_first, like PyTorch), lens: [B] int.

    tc: time-chunk size (multiple of 8).
    bt: batch tile (multiple of 8); with bt < B the leading grid axis is
        'parallel' so v7x can spread batch tiles over its two TensorCores.
    """
    Wih, Whh, bih, bhh, Wf, bf = params
    B, T, D = seq.shape
    H = Whh.shape[1]
    C = Wf.shape[0]

    b_pad = pl.cdiv(B, bt) * bt
    t_pad = pl.cdiv(T, tc) * tc

    lens_i = lens.astype(jnp.int32)
    x = seq.astype(jnp.float32)
    if b_pad != B:
        x = jnp.pad(x, ((0, b_pad - B), (0, 0), (0, 0)))
        lens_i = jnp.pad(lens_i, (0, b_pad - B))          # padded rows: len 0
    if t_pad != T:
        x = jnp.pad(x, ((0, 0), (0, t_pad - T), (0, 0)))

    # Time-major for contiguous per-timestep slices inside the kernel.
    x_tm = jnp.transpose(x, (1, 0, 2))                    # [t_pad, b_pad, D]
    lens2d = lens_i.reshape(b_pad, 1)                     # [b_pad, 1] int32
    wih_t = jnp.transpose(Wih).astype(jnp.float32)        # [D, 4H]
    whh_t = jnp.transpose(Whh).astype(jnp.float32)        # [H, 4H]
    b = (bih + bhh).reshape(1, 4 * H).astype(jnp.float32)
    wf_t = jnp.transpose(Wf).astype(jnp.float32)          # [H, C]
    bf2d = bf.reshape(1, C).astype(jnp.float32)

    # Number of time chunks containing at least one valid step (>= 1).
    nact = jnp.maximum((jnp.max(lens2d) + tc - 1) // tc, 1)
    nact = nact.astype(jnp.int32).reshape(1)

    n_bb = b_pad // bt
    n_tc = t_pad // tc

    out = pl.pallas_call(
        lstm_kernel,
        out_shape=jax.ShapeDtypeStruct((b_pad, C), jnp.float32),
        grid_spec=pltpu.PrefetchScalarGridSpec(
            num_scalar_prefetch=1,                         # nact -> SMEM
            grid=(n_bb, n_tc),
            in_specs=[
                pl.BlockSpec((bt, 1), lambda bi, ci, nact: (bi, 0)),          # lens
                pl.BlockSpec((tc, bt, D), lambda bi, ci, nact: (ci, bi, 0)),  # x chunk
                pl.BlockSpec((D, 4 * H), lambda bi, ci, nact: (0, 0)),        # W_ih^T
                pl.BlockSpec((H, 4 * H), lambda bi, ci, nact: (0, 0)),        # W_hh^T
                pl.BlockSpec((1, 4 * H), lambda bi, ci, nact: (0, 0)),        # bias
                pl.BlockSpec((H, C), lambda bi, ci, nact: (0, 0)),            # W_final^T
                pl.BlockSpec((1, C), lambda bi, ci, nact: (0, 0)),            # b_final
            ],
            out_specs=pl.BlockSpec((bt, C), lambda bi, ci, nact: (bi, 0)),
            scratch_shapes=[
                pltpu.VMEM((bt, H), jnp.float32),   # h state
                pltpu.VMEM((bt, H), jnp.float32),   # c state
            ],
        ),
        compiler_params=pltpu.CompilerParams(
            dimension_semantics=("parallel", "arbitrary")),
    )(nact, lens2d, x_tm, wih_t, whh_t, b, wf_t, bf2d)

    return out[:B]


def reference_forward(seq, lens, params):
    """Pure-JAX f32 reference of the same forward pass (correctness check)."""
    Wih, Whh, bih, bhh, Wf, bf = params
    B, T, D = seq.shape
    H = Whh.shape[1]
    h = jnp.zeros((B, H), jnp.float32)
    c = jnp.zeros((B, H), jnp.float32)
    lens2d = lens.reshape(B, 1)
    for t in range(T):
        x_t = seq[:, t, :]
        gates = x_t @ Wih.T + h @ Whh.T + bih + bhh
        i_g = jax.nn.sigmoid(gates[:, 0 * H:1 * H])
        f_g = jax.nn.sigmoid(gates[:, 1 * H:2 * H])
        g_g = jnp.tanh(gates[:, 2 * H:3 * H])
        o_g = jax.nn.sigmoid(gates[:, 3 * H:4 * H])
        c_new = f_g * c + i_g * g_g
        h_new = o_g * jnp.tanh(c_new)
        mask = t < lens2d
        h = jnp.where(mask, h_new, h)
        c = jnp.where(mask, c_new, c)
    return jax.nn.sigmoid(h @ Wf.T + bf)


if __name__ == "__main__":
    # Small shapes consistent with the module: input feature dim is fixed at 76.
    B, T, D = 8, 24, 76
    H = 32          # hidden_dim (module default is 128; small here)
    C = 10          # n_classes

    key = jax.random.PRNGKey(0)
    ks = jax.random.split(key, 8)
    s = 1.0 / math.sqrt(H)   # PyTorch LSTM/Linear uniform init scale
    Wih = jax.random.uniform(ks[0], (4 * H, D), jnp.float32, -s, s)
    Whh = jax.random.uniform(ks[1], (4 * H, H), jnp.float32, -s, s)
    bih = jax.random.uniform(ks[2], (4 * H,), jnp.float32, -s, s)
    bhh = jax.random.uniform(ks[3], (4 * H,), jnp.float32, -s, s)
    Wf = jax.random.uniform(ks[4], (C, H), jnp.float32, -s, s)
    bf = jax.random.uniform(ks[5], (C,), jnp.float32, -s, s)
    params = (Wih, Whh, bih, bhh, Wf, bf)

    seq = jax.random.normal(ks[6], (B, T, D), jnp.float32)
    lens = jax.random.randint(ks[7], (B,), 1, T + 1).astype(jnp.int32)

    out = standard_lstm_forward(seq, lens, params, tc=16, bt=8)
    out = jax.block_until_ready(out)

    ref = jax.block_until_ready(reference_forward(seq, lens, params))
    # f32 throughout; only MXU accumulation order / EUP transcendental details
    # differ from the XLA reference -> tight tolerance.
    np.testing.assert_allclose(np.asarray(out), np.asarray(ref),
                               rtol=1e-3, atol=1e-3)

    assert out.shape == (B, C)
    print("KERNEL_OK")
</pallas_src>

<mosaic_0001>
module attributes {stable_mosaic.version = 11 : i64} {
  func.func @lstm_kernel(%arg0: i32, %arg1: i32, %arg2: memref<1xi32, #tpu.memory_space<smem>>, %arg3: memref<8x1xi32, #tpu.memory_space<vmem>>, %arg4: memref<16x8x76xf32, #tpu.memory_space<vmem>>, %arg5: memref<76x128xf32, #tpu.memory_space<vmem>>, %arg6: memref<32x128xf32, #tpu.memory_space<vmem>>, %arg7: memref<1x128xf32, #tpu.memory_space<vmem>>, %arg8: memref<32x10xf32, #tpu.memory_space<vmem>>, %arg9: memref<1x10xf32, #tpu.memory_space<vmem>>, %arg10: memref<8x10xf32, #tpu.memory_space<vmem>>, %arg11: memref<8x32xf32, #tpu.memory_space<vmem>>, %arg12: memref<8x32xf32, #tpu.memory_space<vmem>>) attributes {dimension_semantics = [#tpu.dimension_semantics<parallel>, #tpu.dimension_semantics<arbitrary>], iteration_bounds = array<i64: 1, 2>, scalar_prefetch = 1 : i64, scratch_operands = 2 : i64, tpu.core_type = #tpu.core_type<tc>, window_params = [{transform_indices = @transform_0, window_bounds = array<i64: 8, 1>}, {transform_indices = @transform_1, window_bounds = array<i64: 16, 8, 76>}, {pipeline_mode = #tpu.pipeline_mode<synchronous>, transform_indices = @transform_2, window_bounds = array<i64: 76, 128>}, {pipeline_mode = #tpu.pipeline_mode<synchronous>, transform_indices = @transform_3, window_bounds = array<i64: 32, 128>}, {pipeline_mode = #tpu.pipeline_mode<synchronous>, transform_indices = @transform_4, window_bounds = array<i64: 1, 128>}, {pipeline_mode = #tpu.pipeline_mode<synchronous>, transform_indices = @transform_5, window_bounds = array<i64: 32, 10>}, {pipeline_mode = #tpu.pipeline_mode<synchronous>, transform_indices = @transform_6, window_bounds = array<i64: 1, 10>}, {transform_indices = @transform_7, window_bounds = array<i64: 8, 10>}]} {
    %c0 = arith.constant 0 : index
    %0 = memref.load %arg2[%c0] : memref<1xi32, #tpu.memory_space<smem>>
    %c0_i32 = arith.constant 0 : i32
    %1 = arith.cmpi eq, %arg1, %c0_i32 : i32
    %2 = arith.extui %1 : i1 to i32
    %c0_i32_0 = arith.constant 0 : i32
    %3 = arith.cmpi ne, %2, %c0_i32_0 : i32
    scf.if %3 {
      %cst = arith.constant 0.000000e+00 : f32
      %11 = vector.broadcast %cst : f32 to vector<8x32xf32>
      %c0_3 = arith.constant 0 : index
      %c0_4 = arith.constant 0 : index
      %12 = vector.load %arg11[%c0_3, %c0_4] : memref<8x32xf32, #tpu.memory_space<vmem>>, vector<8x32xf32>
      tpu.vector_store %arg11[%c0_3, %c0_4], %11 {strides = array<i32>} : memref<8x32xf32, #tpu.memory_space<vmem>>, vector<8x32xf32>,
      %cst_5 = arith.constant 0.000000e+00 : f32
      %13 = vector.broadcast %cst_5 : f32 to vector<8x32xf32>
      %c0_6 = arith.constant 0 : index
      %c0_7 = arith.constant 0 : index
      %14 = vector.load %arg12[%c0_6, %c0_7] : memref<8x32xf32, #tpu.memory_space<vmem>>, vector<8x32xf32>
      tpu.vector_store %arg12[%c0_6, %c0_7], %13 {strides = array<i32>} : memref<8x32xf32, #tpu.memory_space<vmem>>, vector<8x32xf32>,
    } else {
    }
    %4 = arith.cmpi slt, %arg1, %0 : i32
    %5 = arith.extui %4 : i1 to i32
    %c0_i32_1 = arith.constant 0 : i32
    %6 = arith.cmpi ne, %5, %c0_i32_1 : i32
    scf.if %6 {
      %c0_3 = arith.constant 0 : index
      %c0_4 = arith.constant 0 : index
      %c0_5 = arith.constant 0 : index
      %11 = vector.load %arg4[%c0_3, %c0_4, %c0_5] : memref<16x8x76xf32, #tpu.memory_space<vmem>>, vector<16x8x76xf32>
      %12 = vector.shape_cast %11 : vector<16x8x76xf32> to vector<128x76xf32>
      %c0_6 = arith.constant 0 : index
      %c0_7 = arith.constant 0 : index
      %13 = vector.load %arg5[%c0_6, %c0_7] : memref<76x128xf32, #tpu.memory_space<vmem>>, vector<76x128xf32>
      %cst = arith.constant dense<0.000000e+00> : vector<128x128xf32>
      %14 = tpu.matmul %12, %13, %cst {dimension_numbers = #tpu.dot_dimension_numbers<[1], [0], [0], [1], [0, 0, 1, 1], [], []>} : vector<128x76xf32>, vector<76x128xf32>, vector<128x128xf32> -> vector<128x128xf32>
      %c0_8 = arith.constant 0 : index
      %c0_9 = arith.constant 0 : index
      %15 = vector.load %arg7[%c0_8, %c0_9] : memref<1x128xf32, #tpu.memory_space<vmem>>, vector<1x128xf32>
      %16 = vector.broadcast %15 : vector<1x128xf32> to vector<128x128xf32>
      %17 = arith.addf %14, %16 : vector<128x128xf32>
      %18 = vector.shape_cast %17 : vector<128x128xf32> to vector<16x8x128xf32>
      %c0_10 = arith.constant 0 : index
      %c0_11 = arith.constant 0 : index
      %19 = vector.load %arg3[%c0_10, %c0_11] : memref<8x1xi32, #tpu.memory_space<vmem>>, vector<8x1xi32>
      %c0_12 = arith.constant 0 : index
      %c0_13 = arith.constant 0 : index
      %20 = vector.load %arg6[%c0_12, %c0_13] : memref<32x128xf32, #tpu.memory_space<vmem>>, vector<32x128xf32>
      %c16_i32 = arith.constant 16 : i32
      %21 = arith.muli %arg1, %c16_i32 : i32
      %c0_14 = arith.constant 0 : index
      %c0_15 = arith.constant 0 : index
      %22 = vector.load %arg11[%c0_14, %c0_15] : memref<8x32xf32, #tpu.memory_space<vmem>>, vector<8x32xf32>
      %c0_16 = arith.constant 0 : index
      %c0_17 = arith.constant 0 : index
      %23 = vector.load %arg12[%c0_16, %c0_17] : memref<8x32xf32, #tpu.memory_space<vmem>>, vector<8x32xf32>
      %24 = vector.extract_strided_slice %18 {offsets = [0, 0, 0], sizes = [1, 8, 128], strides = [1, 1, 1]} : vector<16x8x128xf32> to vector<1x8x128xf32>
      %25 = vector.shape_cast %24 : vector<1x8x128xf32> to vector<8x128xf32>
      %cst_18 = arith.constant dense<0.000000e+00> : vector<8x128xf32>
      %26 = tpu.matmul %22, %20, %cst_18 {dimension_numbers = #tpu.dot_dimension_numbers<[1], [0], [0], [1], [0, 0, 1, 1], [], []>} : vector<8x32xf32>, vector<32x128xf32>, vector<8x128xf32> -> vector<8x128xf32>
      %27 = arith.addf %25, %26 : vector<8x128xf32>
      %28 = arith.negf %27 : vector<8x128xf32>
      %29 = math.exp %28 : vector<8x128xf32>
      %cst_19 = arith.constant 1.000000e+00 : f32
      %30 = vector.broadcast %cst_19 : f32 to vector<8x128xf32>
      %31 = arith.addf %30, %29 : vector<8x128xf32>
      %32 = arith.divf %30, %31 : vector<8x128xf32>
      %33 = math.tanh %27 : vector<8x128xf32>
      %34 = vector.extract_strided_slice %32 {offsets = [0, 0], sizes = [8, 32], strides = [1, 1]} : vector<8x128xf32> to vector<8x32xf32>
      %35 = vector.extract_strided_slice %32 {offsets = [0, 32], sizes = [8, 32], strides = [1, 1]} : vector<8x128xf32> to vector<8x32xf32>
      %36 = vector.extract_strided_slice %33 {offsets = [0, 64], sizes = [8, 32], strides = [1, 1]} : vector<8x128xf32> to vector<8x32xf32>
      %37 = vector.extract_strided_slice %32 {offsets = [0, 96], sizes = [8, 32], strides = [1, 1]} : vector<8x128xf32> to vector<8x32xf32>
      %38 = arith.mulf %35, %23 : vector<8x32xf32>
      %39 = arith.mulf %34, %36 : vector<8x32xf32>
      %40 = arith.addf %38, %39 : vector<8x32xf32>
      %41 = math.tanh %40 : vector<8x32xf32>
      %42 = arith.mulf %37, %41 : vector<8x32xf32>
      %c0_i32_20 = arith.constant 0 : i32
      %43 = arith.addi %21, %c0_i32_20 : i32
      %44 = vector.broadcast %43 : i32 to vector<8x1xi32>
      %45 = arith.cmpi slt, %44, %19 : vector<8x1xi32>
      %46 = vector.shape_cast %45 : vector<8x1xi1> to vector<8x1xi1>
      %47 = vector.broadcast %46 : vector<8x1xi1> to vector<8x32xi1>
      %48 = arith.select %47, %42, %22 : vector<8x32xi1>, vector<8x32xf32>
      %49 = vector.shape_cast %45 : vector<8x1xi1> to vector<8x1xi1>
      %50 = vector.broadcast %49 : vector<8x1xi1> to vector<8x32xi1>
      %51 = arith.select %50, %40, %23 : vector<8x32xi1>, vector<8x32xf32>
      %52 = vector.extract_strided_slice %18 {offsets = [1, 0, 0], sizes = [1, 8, 128], strides = [1, 1, 1]} : vector<16x8x128xf32> to vector<1x8x128xf32>
      %53 = vector.shape_cast %52 : vector<1x8x128xf32> to vector<8x128xf32>
      %cst_21 = arith.constant dense<0.000000e+00> : vector<8x128xf32>
      %54 = tpu.matmul %48, %20, %cst_21 {dimension_numbers = #tpu.dot_dimension_numbers<[1], [0], [0], [1], [0, 0, 1, 1], [], []>} : vector<8x32xf32>, vector<32x128xf32>, vector<8x128xf32> -> vector<8x128xf32>
      %55 = arith.addf %53, %54 : vector<8x128xf32>
      %56 = arith.negf %55 : vector<8x128xf32>
      %57 = math.exp %56 : vector<8x128xf32>
      %cst_22 = arith.constant 1.000000e+00 : f32
      %58 = vector.broadcast %cst_22 : f32 to vector<8x128xf32>
      %59 = arith.addf %58, %57 : vector<8x128xf32>
      %60 = arith.divf %58, %59 : vector<8x128xf32>
      %61 = math.tanh %55 : vector<8x128xf32>
      %62 = vector.extract_strided_slice %60 {offsets = [0, 0], sizes = [8, 32], strides = [1, 1]} : vector<8x128xf32> to vector<8x32xf32>
      %63 = vector.extract_strided_slice %60 {offsets = [0, 32], sizes = [8, 32], strides = [1, 1]} : vector<8x128xf32> to vector<8x32xf32>
      %64 = vector.extract_strided_slice %61 {offsets = [0, 64], sizes = [8, 32], strides = [1, 1]} : vector<8x128xf32> to vector<8x32xf32>
      %65 = vector.extract_strided_slice %60 {offsets = [0, 96], sizes = [8, 32], strides = [1, 1]} : vector<8x128xf32> to vector<8x32xf32>
      %66 = arith.mulf %63, %51 : vector<8x32xf32>
      %67 = arith.mulf %62, %64 : vector<8x32xf32>
      %68 = arith.addf %66, %67 : vector<8x32xf32>
      %69 = math.tanh %68 : vector<8x32xf32>
      %70 = arith.mulf %65, %69 : vector<8x32xf32>
      %c1_i32_23 = arith.constant 1 : i32
      %71 = arith.addi %21, %c1_i32_23 : i32
      %72 = vector.broadcast %71 : i32 to vector<8x1xi32>
      %73 = arith.cmpi slt, %72, %19 : vector<8x1xi32>
      %74 = vector.shape_cast %73 : vector<8x1xi1> to vector<8x1xi1>
      %75 = vector.broadcast %74 : vector<8x1xi1> to vector<8x32xi1>
      %76 = arith.select %75, %70, %48 : vector<8x32xi1>, vector<8x32xf32>
      %77 = vector.shape_cast %73 : vector<8x1xi1> to vector<8x1xi1>
      %78 = vector.broadcast %77 : vector<8x1xi1> to vector<8x32xi1>
      %79 = arith.select %78, %68, %51 : vector<8x32xi1>, vector<8x32xf32>
      %80 = vector.extract_strided_slice %18 {offsets = [2, 0, 0], sizes = [1, 8, 128], strides = [1, 1, 1]} : vector<16x8x128xf32> to vector<1x8x128xf32>
      %81 = vector.shape_cast %80 : vector<1x8x128xf32> to vector<8x128xf32>
      %cst_24 = arith.constant dense<0.000000e+00> : vector<8x128xf32>
      %82 = tpu.matmul %76, %20, %cst_24 {dimension_numbers = #tpu.dot_dimension_numbers<[1], [0], [0], [1], [0, 0, 1, 1], [], []>} : vector<8x32xf32>, vector<32x128xf32>, vector<8x128xf32> -> vector<8x128xf32>
      %83 = arith.addf %81, %82 : vector<8x128xf32>
      %84 = arith.negf %83 : vector<8x128xf32>
      %85 = math.exp %84 : vector<8x128xf32>
      %cst_25 = arith.constant 1.000000e+00 : f32
      %86 = vector.broadcast %cst_25 : f32 to vector<8x128xf32>
      %87 = arith.addf %86, %85 : vector<8x128xf32>
      %88 = arith.divf %86, %87 : vector<8x128xf32>
      %89 = math.tanh %83 : vector<8x128xf32>
      %90 = vector.extract_strided_slice %88 {offsets = [0, 0], sizes = [8, 32], strides = [1, 1]} : vector<8x128xf32> to vector<8x32xf32>
      %91 = vector.extract_strided_slice %88 {offsets = [0, 32], sizes = [8, 32], strides = [1, 1]} : vector<8x128xf32> to vector<8x32xf32>
      %92 = vector.extract_strided_slice %89 {offsets = [0, 64], sizes = [8, 32], strides = [1, 1]} : vector<8x128xf32> to vector<8x32xf32>
      %93 = vector.extract_strided_slice %88 {offsets = [0, 96], sizes = [8, 32], strides = [1, 1]} : vector<8x128xf32> to vector<8x32xf32>
      %94 = arith.mulf %91, %79 : vector<8x32xf32>
      %95 = arith.mulf %90, %92 : vector<8x32xf32>
      %96 = arith.addf %94, %95 : vector<8x32xf32>
      %97 = math.tanh %96 : vector<8x32xf32>
      %98 = arith.mulf %93, %97 : vector<8x32xf32>
      %c2_i32 = arith.constant 2 : i32
      %99 = arith.addi %21, %c2_i32 : i32
      %100 = vector.broadcast %99 : i32 to vector<8x1xi32>
      %101 = arith.cmpi slt, %100, %19 : vector<8x1xi32>
      %102 = vector.shape_cast %101 : vector<8x1xi1> to vector<8x1xi1>
      %103 = vector.broadcast %102 : vector<8x1xi1> to vector<8x32xi1>
      %104 = arith.select %103, %98, %76 : vector<8x32xi1>, vector<8x32xf32>
      %105 = vector.shape_cast %101 : vector<8x1xi1> to vector<8x1xi1>
      %106 = vector.broadcast %105 : vector<8x1xi1> to vector<8x32xi1>
      %107 = arith.select %106, %96, %79 : vector<8x32xi1>, vector<8x32xf32>
      %108 = vector.extract_strided_slice %18 {offsets = [3, 0, 0], sizes = [1, 8, 128], strides = [1, 1, 1]} : vector<16x8x128xf32> to vector<1x8x128xf32>
      %109 = vector.shape_cast %108 : vector<1x8x128xf32> to vector<8x128xf32>
      %cst_26 = arith.constant dense<0.000000e+00> : vector<8x128xf32>
      %110 = tpu.matmul %104, %20, %cst_26 {dimension_numbers = #tpu.dot_dimension_numbers<[1], [0], [0], [1], [0, 0, 1, 1], [], []>} : vector<8x32xf32>, vector<32x128xf32>, vector<8x128xf32> -> vector<8x128xf32>
      %111 = arith.addf %109, %110 : vector<8x128xf32>
      %112 = arith.negf %111 : vector<8x128xf32>
      %113 = math.exp %112 : vector<8x128xf32>
      %cst_27 = arith.constant 1.000000e+00 : f32
      %114 = vector.broadcast %cst_27 : f32 to vector<8x128xf32>
      %115 = arith.addf %114, %113 : vector<8x128xf32>
      %116 = arith.divf %114, %115 : vector<8x128xf32>
      %117 = math.tanh %111 : vector<8x128xf32>
      %118 = vector.extract_strided_slice %116 {offsets = [0, 0], sizes = [8, 32], strides = [1, 1]} : vector<8x128xf32> to vector<8x32xf32>
      %119 = vector.extract_strided_slice %116 {offsets = [0, 32], sizes = [8, 32], strides = [1, 1]} : vector<8x128xf32> to vector<8x32xf32>
      %120 = vector.extract_strided_slice %117 {offsets = [0, 64], sizes = [8, 32], strides = [1, 1]} : vector<8x128xf32> to vector<8x32xf32>
      %121 = vector.extract_strided_slice %116 {offsets = [0, 96], sizes = [8, 32], strides = [1, 1]} : vector<8x128xf32> to vector<8x32xf32>
      %122 = arith.mulf %119, %107 : vector<8x32xf32>
      %123 = arith.mulf %118, %120 : vector<8x32xf32>
      %124 = arith.addf %122, %123 : vector<8x32xf32>
      %125 = math.tanh %124 : vector<8x32xf32>
      %126 = arith.mulf %121, %125 : vector<8x32xf32>
      %c3_i32 = arith.constant 3 : i32
      %127 = arith.addi %21, %c3_i32 : i32
      %128 = vector.broadcast %127 : i32 to vector<8x1xi32>
      %129 = arith.cmpi slt, %128, %19 : vector<8x1xi32>
      %130 = vector.shape_cast %129 : vector<8x1xi1> to vector<8x1xi1>
      %131 = vector.broadcast %130 : vector<8x1xi1> to vector<8x32xi1>
      %132 = arith.select %131, %126, %104 : vector<8x32xi1>, vector<8x32xf32>
      %133 = vector.shape_cast %129 : vector<8x1xi1> to vector<8x1xi1>
      %134 = vector.broadcast %133 : vector<8x1xi1> to vector<8x32xi1>
      %135 = arith.select %134, %124, %107 : vector<8x32xi1>, vector<8x32xf32>
      %136 = vector.extract_strided_slice %18 {offsets = [4, 0, 0], sizes = [1, 8, 128], strides = [1, 1, 1]} : vector<16x8x128xf32> to vector<1x8x128xf32>
      %137 = vector.shape_cast %136 : vector<1x8x128xf32> to vector<8x128xf32>
      %cst_28 = arith.constant dense<0.000000e+00> : vector<8x128xf32>
      %138 = tpu.matmul %132, %20, %cst_28 {dimension_numbers = #tpu.dot_dimension_numbers<[1], [0], [0], [1], [0, 0, 1, 1], [], []>} : vector<8x32xf32>, vector<32x128xf32>, vector<8x128xf32> -> vector<8x128xf32>
      %139 = arith.addf %137, %138 : vector<8x128xf32>
      %140 = arith.negf %139 : vector<8x128xf32>
      %141 = math.exp %140 : vector<8x128xf32>
      %cst_29 = arith.constant 1.000000e+00 : f32
      %142 = vector.broadcast %cst_29 : f32 to vector<8x128xf32>
      %143 = arith.addf %142, %141 : vector<8x128xf32>
      %144 = arith.divf %142, %143 : vector<8x128xf32>
      %145 = math.tanh %139 : vector<8x128xf32>
      %146 = vector.extract_strided_slice %144 {offsets = [0, 0], sizes = [8, 32], strides = [1, 1]} : vector<8x128xf32> to vector<8x32xf32>
      %147 = vector.extract_strided_slice %144 {offsets = [0, 32], sizes = [8, 32], strides = [1, 1]} : vector<8x128xf32> to vector<8x32xf32>
      %148 = vector.extract_strided_slice %145 {offsets = [0, 64], sizes = [8, 32], strides = [1, 1]} : vector<8x128xf32> to vector<8x32xf32>
      %149 = vector.extract_strided_slice %144 {offsets = [0, 96], sizes = [8, 32], strides = [1, 1]} : vector<8x128xf32> to vector<8x32xf32>
      %150 = arith.mulf %147, %135 : vector<8x32xf32>
      %151 = arith.mulf %146, %148 : vector<8x32xf32>
      %152 = arith.addf %150, %151 : vector<8x32xf32>
      %153 = math.tanh %152 : vector<8x32xf32>
      %154 = arith.mulf %149, %153 : vector<8x32xf32>
      %c4_i32 = arith.constant 4 : i32
      %155 = arith.addi %21, %c4_i32 : i32
      %156 = vector.broadcast %155 : i32 to vector<8x1xi32>
      %157 = arith.cmpi slt, %156, %19 : vector<8x1xi32>
      %158 = vector.shape_cast %157 : vector<8x1xi1> to vector<8x1xi1>
      %159 = vector.broadcast %158 : vector<8x1xi1> to vector<8x32xi1>
      %160 = arith.select %159, %154, %132 : vector<8x32xi1>, vector<8x32xf32>
      %161 = vector.shape_cast %157 : vector<8x1xi1> to vector<8x1xi1>
      %162 = vector.broadcast %161 : vector<8x1xi1> to vector<8x32xi1>
      %163 = arith.select %162, %152, %135 : vector<8x32xi1>, vector<8x32xf32>
      %164 = vector.extract_strided_slice %18 {offsets = [5, 0, 0], sizes = [1, 8, 128], strides = [1, 1, 1]} : vector<16x8x128xf32> to vector<1x8x128xf32>
      %165 = vector.shape_cast %164 : vector<1x8x128xf32> to vector<8x128xf32>
      %cst_30 = arith.constant dense<0.000000e+00> : vector<8x128xf32>
      %166 = tpu.matmul %160, %20, %cst_30 {dimension_numbers = #tpu.dot_dimension_numbers<[1], [0], [0], [1], [0, 0, 1, 1], [], []>} : vector<8x32xf32>, vector<32x128xf32>, vector<8x128xf32> -> vector<8x128xf32>
      %167 = arith.addf %165, %166 : vector<8x128xf32>
      %168 = arith.negf %167 : vector<8x128xf32>
      %169 = math.exp %168 : vector<8x128xf32>
      %cst_31 = arith.constant 1.000000e+00 : f32
      %170 = vector.broadcast %cst_31 : f32 to vector<8x128xf32>
      %171 = arith.addf %170, %169 : vector<8x128xf32>
      %172 = arith.divf %170, %171 : vector<8x128xf32>
      %173 = math.tanh %167 : vector<8x128xf32>
      %174 = vector.extract_strided_slice %172 {offsets = [0, 0], sizes = [8, 32], strides = [1, 1]} : vector<8x128xf32> to vector<8x32xf32>
      %175 = vector.extract_strided_slice %172 {offsets = [0, 32], sizes = [8, 32], strides = [1, 1]} : vector<8x128xf32> to vector<8x32xf32>
      %176 = vector.extract_strided_slice %173 {offsets = [0, 64], sizes = [8, 32], strides = [1, 1]} : vector<8x128xf32> to vector<8x32xf32>
      %177 = vector.extract_strided_slice %172 {offsets = [0, 96], sizes = [8, 32], strides = [1, 1]} : vector<8x128xf32> to vector<8x32xf32>
      %178 = arith.mulf %175, %163 : vector<8x32xf32>
      %179 = arith.mulf %174, %176 : vector<8x32xf32>
      %180 = arith.addf %178, %179 : vector<8x32xf32>
      %181 = math.tanh %180 : vector<8x32xf32>
      %182 = arith.mulf %177, %181 : vector<8x32xf32>
      %c5_i32 = arith.constant 5 : i32
      %183 = arith.addi %21, %c5_i32 : i32
      %184 = vector.broadcast %183 : i32 to vector<8x1xi32>
      %185 = arith.cmpi slt, %184, %19 : vector<8x1xi32>
      %186 = vector.shape_cast %185 : vector<8x1xi1> to vector<8x1xi1>
      %187 = vector.broadcast %186 : vector<8x1xi1> to vector<8x32xi1>
      %188 = arith.select %187, %182, %160 : vector<8x32xi1>, vector<8x32xf32>
      %189 = vector.shape_cast %185 : vector<8x1xi1> to vector<8x1xi1>
      %190 = vector.broadcast %189 : vector<8x1xi1> to vector<8x32xi1>
      %191 = arith.select %190, %180, %163 : vector<8x32xi1>, vector<8x32xf32>
      %192 = vector.extract_strided_slice %18 {offsets = [6, 0, 0], sizes = [1, 8, 128], strides = [1, 1, 1]} : vector<16x8x128xf32> to vector<1x8x128xf32>
      %193 = vector.shape_cast %192 : vector<1x8x128xf32> to vector<8x128xf32>
      %cst_32 = arith.constant dense<0.000000e+00> : vector<8x128xf32>
      %194 = tpu.matmul %188, %20, %cst_32 {dimension_numbers = #tpu.dot_dimension_numbers<[1], [0], [0], [1], [0, 0, 1, 1], [], []>} : vector<8x32xf32>, vector<32x128xf32>, vector<8x128xf32> -> vector<8x128xf32>
      %195 = arith.addf %193, %194 : vector<8x128xf32>
      %196 = arith.negf %195 : vector<8x128xf32>
      %197 = math.exp %196 : vector<8x128xf32>
      %cst_33 = arith.constant 1.000000e+00 : f32
      %198 = vector.broadcast %cst_33 : f32 to vector<8x128xf32>
      %199 = arith.addf %198, %197 : vector<8x128xf32>
      %200 = arith.divf %198, %199 : vector<8x128xf32>
      %201 = math.tanh %195 : vector<8x128xf32>
      %202 = vector.extract_strided_slice %200 {offsets = [0, 0], sizes = [8, 32], strides = [1, 1]} : vector<8x128xf32> to vector<8x32xf32>
      %203 = vector.extract_strided_slice %200 {offsets = [0, 32], sizes = [8, 32], strides = [1, 1]} : vector<8x128xf32> to vector<8x32xf32>
      %204 = vector.extract_strided_slice %201 {offsets = [0, 64], sizes = [8, 32], strides = [1, 1]} : vector<8x128xf32> to vector<8x32xf32>
      %205 = vector.extract_strided_slice %200 {offsets = [0, 96], sizes = [8, 32], strides = [1, 1]} : vector<8x128xf32> to vector<8x32xf32>
      %206 = arith.mulf %203, %191 : vector<8x32xf32>
      %207 = arith.mulf %202, %204 : vector<8x32xf32>
      %208 = arith.addf %206, %207 : vector<8x32xf32>
      %209 = math.tanh %208 : vector<8x32xf32>
      %210 = arith.mulf %205, %209 : vector<8x32xf32>
      %c6_i32 = arith.constant 6 : i32
      %211 = arith.addi %21, %c6_i32 : i32
      %212 = vector.broadcast %211 : i32 to vector<8x1xi32>
      %213 = arith.cmpi slt, %212, %19 : vector<8x1xi32>
      %214 = vector.shape_cast %213 : vector<8x1xi1> to vector<8x1xi1>
      %215 = vector.broadcast %214 : vector<8x1xi1> to vector<8x32xi1>
      %216 = arith.select %215, %210, %188 : vector<8x32xi1>, vector<8x32xf32>
      %217 = vector.shape_cast %213 : vector<8x1xi1> to vector<8x1xi1>
      %218 = vector.broadcast %217 : vector<8x1xi1> to vector<8x32xi1>
      %219 = arith.select %218, %208, %191 : vector<8x32xi1>, vector<8x32xf32>
      %220 = vector.extract_strided_slice %18 {offsets = [7, 0, 0], sizes = [1, 8, 128], strides = [1, 1, 1]} : vector<16x8x128xf32> to vector<1x8x128xf32>
      %221 = vector.shape_cast %220 : vector<1x8x128xf32> to vector<8x128xf32>
      %cst_34 = arith.constant dense<0.000000e+00> : vector<8x128xf32>
      %222 = tpu.matmul %216, %20, %cst_34 {dimension_numbers = #tpu.dot_dimension_numbers<[1], [0], [0], [1], [0, 0, 1, 1], [], []>} : vector<8x32xf32>, vector<32x128xf32>, vector<8x128xf32> -> vector<8x128xf32>
      %223 = arith.addf %221, %222 : vector<8x128xf32>
      %224 = arith.negf %223 : vector<8x128xf32>
      %225 = math.exp %224 : vector<8x128xf32>
      %cst_35 = arith.constant 1.000000e+00 : f32
      %226 = vector.broadcast %cst_35 : f32 to vector<8x128xf32>
      %227 = arith.addf %226, %225 : vector<8x128xf32>
      %228 = arith.divf %226, %227 : vector<8x128xf32>
      %229 = math.tanh %223 : vector<8x128xf32>
      %230 = vector.extract_strided_slice %228 {offsets = [0, 0], sizes = [8, 32], strides = [1, 1]} : vector<8x128xf32> to vector<8x32xf32>
      %231 = vector.extract_strided_slice %228 {offsets = [0, 32], sizes = [8, 32], strides = [1, 1]} : vector<8x128xf32> to vector<8x32xf32>
      %232 = vector.extract_strided_slice %229 {offsets = [0, 64], sizes = [8, 32], strides = [1, 1]} : vector<8x128xf32> to vector<8x32xf32>
      %233 = vector.extract_strided_slice %228 {offsets = [0, 96], sizes = [8, 32], strides = [1, 1]} : vector<8x128xf32> to vector<8x32xf32>
      %234 = arith.mulf %231, %219 : vector<8x32xf32>
      %235 = arith.mulf %230, %232 : vector<8x32xf32>
      %236 = arith.addf %234, %235 : vector<8x32xf32>
      %237 = math.tanh %236 : vector<8x32xf32>
      %238 = arith.mulf %233, %237 : vector<8x32xf32>
      %c7_i32 = arith.constant 7 : i32
      %239 = arith.addi %21, %c7_i32 : i32
      %240 = vector.broadcast %239 : i32 to vector<8x1xi32>
      %241 = arith.cmpi slt, %240, %19 : vector<8x1xi32>
      %242 = vector.shape_cast %241 : vector<8x1xi1> to vector<8x1xi1>
      %243 = vector.broadcast %242 : vector<8x1xi1> to vector<8x32xi1>
      %244 = arith.select %243, %238, %216 : vector<8x32xi1>, vector<8x32xf32>
      %245 = vector.shape_cast %241 : vector<8x1xi1> to vector<8x1xi1>
      %246 = vector.broadcast %245 : vector<8x1xi1> to vector<8x32xi1>
      %247 = arith.select %246, %236, %219 : vector<8x32xi1>, vector<8x32xf32>
      %248 = vector.extract_strided_slice %18 {offsets = [8, 0, 0], sizes = [1, 8, 128], strides = [1, 1, 1]} : vector<16x8x128xf32> to vector<1x8x128xf32>
      %249 = vector.shape_cast %248 : vector<1x8x128xf32> to vector<8x128xf32>
      %cst_36 = arith.constant dense<0.000000e+00> : vector<8x128xf32>
      %250 = tpu.matmul %244, %20, %cst_36 {dimension_numbers = #tpu.dot_dimension_numbers<[1], [0], [0], [1], [0, 0, 1, 1], [], []>} : vector<8x32xf32>, vector<32x128xf32>, vector<8x128xf32> -> vector<8x128xf32>
      %251 = arith.addf %249, %250 : vector<8x128xf32>
      %252 = arith.negf %251 : vector<8x128xf32>
      %253 = math.exp %252 : vector<8x128xf32>
      %cst_37 = arith.constant 1.000000e+00 : f32
      %254 = vector.broadcast %cst_37 : f32 to vector<8x128xf32>
      %255 = arith.addf %254, %253 : vector<8x128xf32>
      %256 = arith.divf %254, %255 : vector<8x128xf32>
      %257 = math.tanh %251 : vector<8x128xf32>
      %258 = vector.extract_strided_slice %256 {offsets = [0, 0], sizes = [8, 32], strides = [1, 1]} : vector<8x128xf32> to vector<8x32xf32>
      %259 = vector.extract_strided_slice %256 {offsets = [0, 32], sizes = [8, 32], strides = [1, 1]} : vector<8x128xf32> to vector<8x32xf32>
      %260 = vector.extract_strided_slice %257 {offsets = [0, 64], sizes = [8, 32], strides = [1, 1]} : vector<8x128xf32> to vector<8x32xf32>
      %261 = vector.extract_strided_slice %256 {offsets = [0, 96], sizes = [8, 32], strides = [1, 1]} : vector<8x128xf32> to vector<8x32xf32>
      %262 = arith.mulf %259, %247 : vector<8x32xf32>
      %263 = arith.mulf %258, %260 : vector<8x32xf32>
      %264 = arith.addf %262, %263 : vector<8x32xf32>
      %265 = math.tanh %264 : vector<8x32xf32>
      %266 = arith.mulf %261, %265 : vector<8x32xf32>
      %c8_i32 = arith.constant 8 : i32
      %267 = arith.addi %21, %c8_i32 : i32
      %268 = vector.broadcast %267 : i32 to vector<8x1xi32>
      %269 = arith.cmpi slt, %268, %19 : vector<8x1xi32>
      %270 = vector.shape_cast %269 : vector<8x1xi1> to vector<8x1xi1>
      %271 = vector.broadcast %270 : vector<8x1xi1> to vector<8x32xi1>
      %272 = arith.select %271, %266, %244 : vector<8x32xi1>, vector<8x32xf32>
      %273 = vector.shape_cast %269 : vector<8x1xi1> to vector<8x1xi1>
      %274 = vector.broadcast %273 : vector<8x1xi1> to vector<8x32xi1>
      %275 = arith.select %274, %264, %247 : vector<8x32xi1>, vector<8x32xf32>
      %276 = vector.extract_strided_slice %18 {offsets = [9, 0, 0], sizes = [1, 8, 128], strides = [1, 1, 1]} : vector<16x8x128xf32> to vector<1x8x128xf32>
      %277 = vector.shape_cast %276 : vector<1x8x128xf32> to vector<8x128xf32>
      %cst_38 = arith.constant dense<0.000000e+00> : vector<8x128xf32>
      %278 = tpu.matmul %272, %20, %cst_38 {dimension_numbers = #tpu.dot_dimension_numbers<[1], [0], [0], [1], [0, 0, 1, 1], [], []>} : vector<8x32xf32>, vector<32x128xf32>, vector<8x128xf32> -> vector<8x128xf32>
      %279 = arith.addf %277, %278 : vector<8x128xf32>
      %280 = arith.negf %279 : vector<8x128xf32>
      %281 = math.exp %280 : vector<8x128xf32>
      %cst_39 = arith.constant 1.000000e+00 : f32
      %282 = vector.broadcast %cst_39 : f32 to vector<8x128xf32>
      %283 = arith.addf %282, %281 : vector<8x128xf32>
      %284 = arith.divf %282, %283 : vector<8x128xf32>
      %285 = math.tanh %279 : vector<8x128xf32>
      %286 = vector.extract_strided_slice %284 {offsets = [0, 0], sizes = [8, 32], strides = [1, 1]} : vector<8x128xf32> to vector<8x32xf32>
      %287 = vector.extract_strided_slice %284 {offsets = [0, 32], sizes = [8, 32], strides = [1, 1]} : vector<8x128xf32> to vector<8x32xf32>
      %288 = vector.extract_strided_slice %285 {offsets = [0, 64], sizes = [8, 32], strides = [1, 1]} : vector<8x128xf32> to vector<8x32xf32>
      %289 = vector.extract_strided_slice %284 {offsets = [0, 96], sizes = [8, 32], strides = [1, 1]} : vector<8x128xf32> to vector<8x32xf32>
      %290 = arith.mulf %287, %275 : vector<8x32xf32>
      %291 = arith.mulf %286, %288 : vector<8x32xf32>
      %292 = arith.addf %290, %291 : vector<8x32xf32>
      %293 = math.tanh %292 : vector<8x32xf32>
      %294 = arith.mulf %289, %293 : vector<8x32xf32>
      %c9_i32 = arith.constant 9 : i32
      %295 = arith.addi %21, %c9_i32 : i32
      %296 = vector.broadcast %295 : i32 to vector<8x1xi32>
      %297 = arith.cmpi slt, %296, %19 : vector<8x1xi32>
      %298 = vector.shape_cast %297 : vector<8x1xi1> to vector<8x1xi1>
      %299 = vector.broadcast %298 : vector<8x1xi1> to vector<8x32xi1>
      %300 = arith.select %299, %294, %272 : vector<8x32xi1>, vector<8x32xf32>
      %301 = vector.shape_cast %297 : vector<8x1xi1> to vector<8x1xi1>
      %302 = vector.broadcast %301 : vector<8x1xi1> to vector<8x32xi1>
      %303 = arith.select %302, %292, %275 : vector<8x32xi1>, vector<8x32xf32>
      %304 = vector.extract_strided_slice %18 {offsets = [10, 0, 0], sizes = [1, 8, 128], strides = [1, 1, 1]} : vector<16x8x128xf32> to vector<1x8x128xf32>
      %305 = vector.shape_cast %304 : vector<1x8x128xf32> to vector<8x128xf32>
      %cst_40 = arith.constant dense<0.000000e+00> : vector<8x128xf32>
      %306 = tpu.matmul %300, %20, %cst_40 {dimension_numbers = #tpu.dot_dimension_numbers<[1], [0], [0], [1], [0, 0, 1, 1], [], []>} : vector<8x32xf32>, vector<32x128xf32>, vector<8x128xf32> -> vector<8x128xf32>
      %307 = arith.addf %305, %306 : vector<8x128xf32>
      %308 = arith.negf %307 : vector<8x128xf32>
      %309 = math.exp %308 : vector<8x128xf32>
      %cst_41 = arith.constant 1.000000e+00 : f32
      %310 = vector.broadcast %cst_41 : f32 to vector<8x128xf32>
      %311 = arith.addf %310, %309 : vector<8x128xf32>
      %312 = arith.divf %310, %311 : vector<8x128xf32>
      %313 = math.tanh %307 : vector<8x128xf32>
      %314 = vector.extract_strided_slice %312 {offsets = [0, 0], sizes = [8, 32], strides = [1, 1]} : vector<8x128xf32> to vector<8x32xf32>
      %315 = vector.extract_strided_slice %312 {offsets = [0, 32], sizes = [8, 32], strides = [1, 1]} : vector<8x128xf32> to vector<8x32xf32>
      %316 = vector.extract_strided_slice %313 {offsets = [0, 64], sizes = [8, 32], strides = [1, 1]} : vector<8x128xf32> to vector<8x32xf32>
      %317 = vector.extract_strided_slice %312 {offsets = [0, 96], sizes = [8, 32], strides = [1, 1]} : vector<8x128xf32> to vector<8x32xf32>
      %318 = arith.mulf %315, %303 : vector<8x32xf32>
      %319 = arith.mulf %314, %316 : vector<8x32xf32>
      %320 = arith.addf %318, %319 : vector<8x32xf32>
      %321 = math.tanh %320 : vector<8x32xf32>
      %322 = arith.mulf %317, %321 : vector<8x32xf32>
      %c10_i32 = arith.constant 10 : i32
      %323 = arith.addi %21, %c10_i32 : i32
      %324 = vector.broadcast %323 : i32 to vector<8x1xi32>
      %325 = arith.cmpi slt, %324, %19 : vector<8x1xi32>
      %326 = vector.shape_cast %325 : vector<8x1xi1> to vector<8x1xi1>
      %327 = vector.broadcast %326 : vector<8x1xi1> to vector<8x32xi1>
      %328 = arith.select %327, %322, %300 : vector<8x32xi1>, vector<8x32xf32>
      %329 = vector.shape_cast %325 : vector<8x1xi1> to vector<8x1xi1>
      %330 = vector.broadcast %329 : vector<8x1xi1> to vector<8x32xi1>
      %331 = arith.select %330, %320, %303 : vector<8x32xi1>, vector<8x32xf32>
      %332 = vector.extract_strided_slice %18 {offsets = [11, 0, 0], sizes = [1, 8, 128], strides = [1, 1, 1]} : vector<16x8x128xf32> to vector<1x8x128xf32>
      %333 = vector.shape_cast %332 : vector<1x8x128xf32> to vector<8x128xf32>
      %cst_42 = arith.constant dense<0.000000e+00> : vector<8x128xf32>
      %334 = tpu.matmul %328, %20, %cst_42 {dimension_numbers = #tpu.dot_dimension_numbers<[1], [0], [0], [1], [0, 0, 1, 1], [], []>} : vector<8x32xf32>, vector<32x128xf32>, vector<8x128xf32> -> vector<8x128xf32>
      %335 = arith.addf %333, %334 : vector<8x128xf32>
      %336 = arith.negf %335 : vector<8x128xf32>
      %337 = math.exp %336 : vector<8x128xf32>
      %cst_43 = arith.constant 1.000000e+00 : f32
      %338 = vector.broadcast %cst_43 : f32 to vector<8x128xf32>
      %339 = arith.addf %338, %337 : vector<8x128xf32>
      %340 = arith.divf %338, %339 : vector<8x128xf32>
      %341 = math.tanh %335 : vector<8x128xf32>
      %342 = vector.extract_strided_slice %340 {offsets = [0, 0], sizes = [8, 32], strides = [1, 1]} : vector<8x128xf32> to vector<8x32xf32>
      %343 = vector.extract_strided_slice %340 {offsets = [0, 32], sizes = [8, 32], strides = [1, 1]} : vector<8x128xf32> to vector<8x32xf32>
      %344 = vector.extract_strided_slice %341 {offsets = [0, 64], sizes = [8, 32], strides = [1, 1]} : vector<8x128xf32> to vector<8x32xf32>
      %345 = vector.extract_strided_slice %340 {offsets = [0, 96], sizes = [8, 32], strides = [1, 1]} : vector<8x128xf32> to vector<8x32xf32>
      %346 = arith.mulf %343, %331 : vector<8x32xf32>
      %347 = arith.mulf %342, %344 : vector<8x32xf32>
      %348 = arith.addf %346, %347 : vector<8x32xf32>
      %349 = math.tanh %348 : vector<8x32xf32>
      %350 = arith.mulf %345, %349 : vector<8x32xf32>
      %c11_i32 = arith.constant 11 : i32
      %351 = arith.addi %21, %c11_i32 : i32
      %352 = vector.broadcast %351 : i32 to vector<8x1xi32>
      %353 = arith.cmpi slt, %352, %19 : vector<8x1xi32>
      %354 = vector.shape_cast %353 : vector<8x1xi1> to vector<8x1xi1>
      %355 = vector.broadcast %354 : vector<8x1xi1> to vector<8x32xi1>
      %356 = arith.select %355, %350, %328 : vector<8x32xi1>, vector<8x32xf32>
      %357 = vector.shape_cast %353 : vector<8x1xi1> to vector<8x1xi1>
      %358 = vector.broadcast %357 : vector<8x1xi1> to vector<8x32xi1>
      %359 = arith.select %358, %348, %331 : vector<8x32xi1>, vector<8x32xf32>
      %360 = vector.extract_strided_slice %18 {offsets = [12, 0, 0], sizes = [1, 8, 128], strides = [1, 1, 1]} : vector<16x8x128xf32> to vector<1x8x128xf32>
      %361 = vector.shape_cast %360 : vector<1x8x128xf32> to vector<8x128xf32>
      %cst_44 = arith.constant dense<0.000000e+00> : vector<8x128xf32>
      %362 = tpu.matmul %356, %20, %cst_44 {dimension_numbers = #tpu.dot_dimension_numbers<[1], [0], [0], [1], [0, 0, 1, 1], [], []>} : vector<8x32xf32>, vector<32x128xf32>, vector<8x128xf32> -> vector<8x128xf32>
      %363 = arith.addf %361, %362 : vector<8x128xf32>
      %364 = arith.negf %363 : vector<8x128xf32>
      %365 = math.exp %364 : vector<8x128xf32>
      %cst_45 = arith.constant 1.000000e+00 : f32
      %366 = vector.broadcast %cst_45 : f32 to vector<8x128xf32>
      %367 = arith.addf %366, %365 : vector<8x128xf32>
      %368 = arith.divf %366, %367 : vector<8x128xf32>
      %369 = math.tanh %363 : vector<8x128xf32>
      %370 = vector.extract_strided_slice %368 {offsets = [0, 0], sizes = [8, 32], strides = [1, 1]} : vector<8x128xf32> to vector<8x32xf32>
      %371 = vector.extract_strided_slice %368 {offsets = [0, 32], sizes = [8, 32], strides = [1, 1]} : vector<8x128xf32> to vector<8x32xf32>
      %372 = vector.extract_strided_slice %369 {offsets = [0, 64], sizes = [8, 32], strides = [1, 1]} : vector<8x128xf32> to vector<8x32xf32>
      %373 = vector.extract_strided_slice %368 {offsets = [0, 96], sizes = [8, 32], strides = [1, 1]} : vector<8x128xf32> to vector<8x32xf32>
      %374 = arith.mulf %371, %359 : vector<8x32xf32>
      %375 = arith.mulf %370, %372 : vector<8x32xf32>
      %376 = arith.addf %374, %375 : vector<8x32xf32>
      %377 = math.tanh %376 : vector<8x32xf32>
      %378 = arith.mulf %373, %377 : vector<8x32xf32>
      %c12_i32 = arith.constant 12 : i32
      %379 = arith.addi %21, %c12_i32 : i32
      %380 = vector.broadcast %379 : i32 to vector<8x1xi32>
      %381 = arith.cmpi slt, %380, %19 : vector<8x1xi32>
      %382 = vector.shape_cast %381 : vector<8x1xi1> to vector<8x1xi1>
      %383 = vector.broadcast %382 : vector<8x1xi1> to vector<8x32xi1>
      %384 = arith.select %383, %378, %356 : vector<8x32xi1>, vector<8x32xf32>
      %385 = vector.shape_cast %381 : vector<8x1xi1> to vector<8x1xi1>
      %386 = vector.broadcast %385 : vector<8x1xi1> to vector<8x32xi1>
      %387 = arith.select %386, %376, %359 : vector<8x32xi1>, vector<8x32xf32>
      %388 = vector.extract_strided_slice %18 {offsets = [13, 0, 0], sizes = [1, 8, 128], strides = [1, 1, 1]} : vector<16x8x128xf32> to vector<1x8x128xf32>
      %389 = vector.shape_cast %388 : vector<1x8x128xf32> to vector<8x128xf32>
      %cst_46 = arith.constant dense<0.000000e+00> : vector<8x128xf32>
      %390 = tpu.matmul %384, %20, %cst_46 {dimension_numbers = #tpu.dot_dimension_numbers<[1], [0], [0], [1], [0, 0, 1, 1], [], []>} : vector<8x32xf32>, vector<32x128xf32>, vector<8x128xf32> -> vector<8x128xf32>
      %391 = arith.addf %389, %390 : vector<8x128xf32>
      %392 = arith.negf %391 : vector<8x128xf32>
      %393 = math.exp %392 : vector<8x128xf32>
      %cst_47 = arith.constant 1.000000e+00 : f32
      %394 = vector.broadcast %cst_47 : f32 to vector<8x128xf32>
      %395 = arith.addf %394, %393 : vector<8x128xf32>
      %396 = arith.divf %394, %395 : vector<8x128xf32>
      %397 = math.tanh %391 : vector<8x128xf32>
      %398 = vector.extract_strided_slice %396 {offsets = [0, 0], sizes = [8, 32], strides = [1, 1]} : vector<8x128xf32> to vector<8x32xf32>
      %399 = vector.extract_strided_slice %396 {offsets = [0, 32], sizes = [8, 32], strides = [1, 1]} : vector<8x128xf32> to vector<8x32xf32>
      %400 = vector.extract_strided_slice %397 {offsets = [0, 64], sizes = [8, 32], strides = [1, 1]} : vector<8x128xf32> to vector<8x32xf32>
      %401 = vector.extract_strided_slice %396 {offsets = [0, 96], sizes = [8, 32], strides = [1, 1]} : vector<8x128xf32> to vector<8x32xf32>
      %402 = arith.mulf %399, %387 : vector<8x32xf32>
      %403 = arith.mulf %398, %400 : vector<8x32xf32>
      %404 = arith.addf %402, %403 : vector<8x32xf32>
      %405 = math.tanh %404 : vector<8x32xf32>
      %406 = arith.mulf %401, %405 : vector<8x32xf32>
      %c13_i32 = arith.constant 13 : i32
      %407 = arith.addi %21, %c13_i32 : i32
      %408 = vector.broadcast %407 : i32 to vector<8x1xi32>
      %409 = arith.cmpi slt, %408, %19 : vector<8x1xi32>
      %410 = vector.shape_cast %409 : vector<8x1xi1> to vector<8x1xi1>
      %411 = vector.broadcast %410 : vector<8x1xi1> to vector<8x32xi1>
      %412 = arith.select %411, %406, %384 : vector<8x32xi1>, vector<8x32xf32>
      %413 = vector.shape_cast %409 : vector<8x1xi1> to vector<8x1xi1>
      %414 = vector.broadcast %413 : vector<8x1xi1> to vector<8x32xi1>
      %415 = arith.select %414, %404, %387 : vector<8x32xi1>, vector<8x32xf32>
      %416 = vector.extract_strided_slice %18 {offsets = [14, 0, 0], sizes = [1, 8, 128], strides = [1, 1, 1]} : vector<16x8x128xf32> to vector<1x8x128xf32>
      %417 = vector.shape_cast %416 : vector<1x8x128xf32> to vector<8x128xf32>
      %cst_48 = arith.constant dense<0.000000e+00> : vector<8x128xf32>
      %418 = tpu.matmul %412, %20, %cst_48 {dimension_numbers = #tpu.dot_dimension_numbers<[1], [0], [0], [1], [0, 0, 1, 1], [], []>} : vector<8x32xf32>, vector<32x128xf32>, vector<8x128xf32> -> vector<8x128xf32>
      %419 = arith.addf %417, %418 : vector<8x128xf32>
      %420 = arith.negf %419 : vector<8x128xf32>
      %421 = math.exp %420 : vector<8x128xf32>
      %cst_49 = arith.constant 1.000000e+00 : f32
      %422 = vector.broadcast %cst_49 : f32 to vector<8x128xf32>
      %423 = arith.addf %422, %421 : vector<8x128xf32>
      %424 = arith.divf %422, %423 : vector<8x128xf32>
      %425 = math.tanh %419 : vector<8x128xf32>
      %426 = vector.extract_strided_slice %424 {offsets = [0, 0], sizes = [8, 32], strides = [1, 1]} : vector<8x128xf32> to vector<8x32xf32>
      %427 = vector.extract_strided_slice %424 {offsets = [0, 32], sizes = [8, 32], strides = [1, 1]} : vector<8x128xf32> to vector<8x32xf32>
      %428 = vector.extract_strided_slice %425 {offsets = [0, 64], sizes = [8, 32], strides = [1, 1]} : vector<8x128xf32> to vector<8x32xf32>
      %429 = vector.extract_strided_slice %424 {offsets = [0, 96], sizes = [8, 32], strides = [1, 1]} : vector<8x128xf32> to vector<8x32xf32>
      %430 = arith.mulf %427, %415 : vector<8x32xf32>
      %431 = arith.mulf %426, %428 : vector<8x32xf32>
      %432 = arith.addf %430, %431 : vector<8x32xf32>
      %433 = math.tanh %432 : vector<8x32xf32>
      %434 = arith.mulf %429, %433 : vector<8x32xf32>
      %c14_i32 = arith.constant 14 : i32
      %435 = arith.addi %21, %c14_i32 : i32
      %436 = vector.broadcast %435 : i32 to vector<8x1xi32>
      %437 = arith.cmpi slt, %436, %19 : vector<8x1xi32>
      %438 = vector.shape_cast %437 : vector<8x1xi1> to vector<8x1xi1>
      %439 = vector.broadcast %438 : vector<8x1xi1> to vector<8x32xi1>
      %440 = arith.select %439, %434, %412 : vector<8x32xi1>, vector<8x32xf32>
      %441 = vector.shape_cast %437 : vector<8x1xi1> to vector<8x1xi1>
      %442 = vector.broadcast %441 : vector<8x1xi1> to vector<8x32xi1>
      %443 = arith.select %442, %432, %415 : vector<8x32xi1>, vector<8x32xf32>
      %444 = vector.extract_strided_slice %18 {offsets = [15, 0, 0], sizes = [1, 8, 128], strides = [1, 1, 1]} : vector<16x8x128xf32> to vector<1x8x128xf32>
      %445 = vector.shape_cast %444 : vector<1x8x128xf32> to vector<8x128xf32>
      %cst_50 = arith.constant dense<0.000000e+00> : vector<8x128xf32>
      %446 = tpu.matmul %440, %20, %cst_50 {dimension_numbers = #tpu.dot_dimension_numbers<[1], [0], [0], [1], [0, 0, 1, 1], [], []>} : vector<8x32xf32>, vector<32x128xf32>, vector<8x128xf32> -> vector<8x128xf32>
      %447 = arith.addf %445, %446 : vector<8x128xf32>
      %448 = arith.negf %447 : vector<8x128xf32>
      %449 = math.exp %448 : vector<8x128xf32>
      %cst_51 = arith.constant 1.000000e+00 : f32
      %450 = vector.broadcast %cst_51 : f32 to vector<8x128xf32>
      %451 = arith.addf %450, %449 : vector<8x128xf32>
      %452 = arith.divf %450, %451 : vector<8x128xf32>
      %453 = math.tanh %447 : vector<8x128xf32>
      %454 = vector.extract_strided_slice %452 {offsets = [0, 0], sizes = [8, 32], strides = [1, 1]} : vector<8x128xf32> to vector<8x32xf32>
      %455 = vector.extract_strided_slice %452 {offsets = [0, 32], sizes = [8, 32], strides = [1, 1]} : vector<8x128xf32> to vector<8x32xf32>
      %456 = vector.extract_strided_slice %453 {offsets = [0, 64], sizes = [8, 32], strides = [1, 1]} : vector<8x128xf32> to vector<8x32xf32>
      %457 = vector.extract_strided_slice %452 {offsets = [0, 96], sizes = [8, 32], strides = [1, 1]} : vector<8x128xf32> to vector<8x32xf32>
      %458 = arith.mulf %455, %443 : vector<8x32xf32>
      %459 = arith.mulf %454, %456 : vector<8x32xf32>
      %460 = arith.addf %458, %459 : vector<8x32xf32>
      %461 = math.tanh %460 : vector<8x32xf32>
      %462 = arith.mulf %457, %461 : vector<8x32xf32>
      %c15_i32 = arith.constant 15 : i32
      %463 = arith.addi %21, %c15_i32 : i32
      %464 = vector.broadcast %463 : i32 to vector<8x1xi32>
      %465 = arith.cmpi slt, %464, %19 : vector<8x1xi32>
      %466 = vector.shape_cast %465 : vector<8x1xi1> to vector<8x1xi1>
      %467 = vector.broadcast %466 : vector<8x1xi1> to vector<8x32xi1>
      %468 = arith.select %467, %462, %440 : vector<8x32xi1>, vector<8x32xf32>
      %469 = vector.shape_cast %465 : vector<8x1xi1> to vector<8x1xi1>
      %470 = vector.broadcast %469 : vector<8x1xi1> to vector<8x32xi1>
      %471 = arith.select %470, %460, %443 : vector<8x32xi1>, vector<8x32xf32>
      %c0_52 = arith.constant 0 : index
      %c0_53 = arith.constant 0 : index
      %472 = vector.load %arg11[%c0_52, %c0_53] : memref<8x32xf32, #tpu.memory_space<vmem>>, vector<8x32xf32>
      tpu.vector_store %arg11[%c0_52, %c0_53], %468 {strides = array<i32>} : memref<8x32xf32, #tpu.memory_space<vmem>>, vector<8x32xf32>,
      %c0_54 = arith.constant 0 : index
      %c0_55 = arith.constant 0 : index
      %473 = vector.load %arg12[%c0_54, %c0_55] : memref<8x32xf32, #tpu.memory_space<vmem>>, vector<8x32xf32>
      tpu.vector_store %arg12[%c0_54, %c0_55], %471 {strides = array<i32>} : memref<8x32xf32, #tpu.memory_space<vmem>>, vector<8x32xf32>,
    } else {
    }
    %c1_i32 = arith.constant 1 : i32
    %7 = arith.subi %0, %c1_i32 : i32
    %8 = arith.cmpi eq, %arg1, %7 : i32
    %9 = arith.extui %8 : i1 to i32
    %c0_i32_2 = arith.constant 0 : i32
    %10 = arith.cmpi ne, %9, %c0_i32_2 : i32
    scf.if %10 {
      %c0_3 = arith.constant 0 : index
      %c0_4 = arith.constant 0 : index
      %11 = vector.load %arg11[%c0_3, %c0_4] : memref<8x32xf32, #tpu.memory_space<vmem>>, vector<8x32xf32>
      %c0_5 = arith.constant 0 : index
      %c0_6 = arith.constant 0 : index
      %12 = vector.load %arg8[%c0_5, %c0_6] : memref<32x10xf32, #tpu.memory_space<vmem>>, vector<32x10xf32>
      %cst = arith.constant dense<0.000000e+00> : vector<8x10xf32>
      %13 = tpu.matmul %11, %12, %cst {dimension_numbers = #tpu.dot_dimension_numbers<[1], [0], [0], [1], [0, 0, 1, 1], [], []>} : vector<8x32xf32>, vector<32x10xf32>, vector<8x10xf32> -> vector<8x10xf32>
      %c0_7 = arith.constant 0 : index
      %c0_8 = arith.constant 0 : index
      %14 = vector.load %arg9[%c0_7, %c0_8] : memref<1x10xf32, #tpu.memory_space<vmem>>, vector<1x10xf32>
      %15 = vector.broadcast %14 : vector<1x10xf32> to vector<8x10xf32>
      %16 = arith.addf %13, %15 : vector<8x10xf32>
      %17 = arith.negf %16 : vector<8x10xf32>
      %18 = math.exp %17 : vector<8x10xf32>
      %cst_9 = arith.constant 1.000000e+00 : f32
      %19 = vector.broadcast %cst_9 : f32 to vector<8x10xf32>
      %20 = arith.addf %19, %18 : vector<8x10xf32>
      %21 = arith.divf %19, %20 : vector<8x10xf32>
      %c0_10 = arith.constant 0 : index
      %c0_11 = arith.constant 0 : index
      %22 = vector.load %arg10[%c0_10, %c0_11] : memref<8x10xf32, #tpu.memory_space<vmem>>, vector<8x10xf32>
      tpu.vector_store %arg10[%c0_10, %c0_11], %21 {strides = array<i32>} : memref<8x10xf32, #tpu.memory_space<vmem>>, vector<8x10xf32>,
    } else {
    }
    return
  }
  func.func @transform_0(%arg0: i32, %arg1: i32, %arg2: memref<1xi32, #tpu.memory_space<smem>>) -> (i32, i32) {
    %c0_i32 = arith.constant 0 : i32
    %c0_i32_0 = arith.constant 0 : i32
    return %arg0, %c0_i32 : i32, i32
  }
  func.func @transform_1(%arg0: i32, %arg1: i32, %arg2: memref<1xi32, #tpu.memory_space<smem>>) -> (i32, i32, i32) {
    %c0_i32 = arith.constant 0 : i32
    %c0_i32_0 = arith.constant 0 : i32
    return %arg1, %arg0, %c0_i32 : i32, i32, i32
  }
  func.func @transform_2(%arg0: i32, %arg1: i32, %arg2: memref<1xi32, #tpu.memory_space<smem>>) -> (i32, i32) {
    %c0_i32 = arith.constant 0 : i32
    %c0_i32_0 = arith.constant 0 : i32
    %c0_i32_1 = arith.constant 0 : i32
    return %c0_i32, %c0_i32_0 : i32, i32
  }
  func.func @transform_3(%arg0: i32, %arg1: i32, %arg2: memref<1xi32, #tpu.memory_space<smem>>) -> (i32, i32) {
    %c0_i32 = arith.constant 0 : i32
    %c0_i32_0 = arith.constant 0 : i32
    %c0_i32_1 = arith.constant 0 : i32
    return %c0_i32, %c0_i32_0 : i32, i32
  }
  func.func @transform_4(%arg0: i32, %arg1: i32, %arg2: memref<1xi32, #tpu.memory_space<smem>>) -> (i32, i32) {
    %c0_i32 = arith.constant 0 : i32
    %c0_i32_0 = arith.constant 0 : i32
    %c0_i32_1 = arith.constant 0 : i32
    return %c0_i32, %c0_i32_0 : i32, i32
  }
  func.func @transform_5(%arg0: i32, %arg1: i32, %arg2: memref<1xi32, #tpu.memory_space<smem>>) -> (i32, i32) {
    %c0_i32 = arith.constant 0 : i32
    %c0_i32_0 = arith.constant 0 : i32
    %c0_i32_1 = arith.constant 0 : i32
    return %c0_i32, %c0_i32_0 : i32, i32
  }
  func.func @transform_6(%arg0: i32, %arg1: i32, %arg2: memref<1xi32, #tpu.memory_space<smem>>) -> (i32, i32) {
    %c0_i32 = arith.constant 0 : i32
    %c0_i32_0 = arith.constant 0 : i32
    %c0_i32_1 = arith.constant 0 : i32
    return %c0_i32, %c0_i32_0 : i32, i32
  }
  func.func @transform_7(%arg0: i32, %arg1: i32, %arg2: memref<1xi32, #tpu.memory_space<smem>>) -> (i32, i32) {
    %c0_i32 = arith.constant 0 : i32
    %c0_i32_0 = arith.constant 0 : i32
    return %arg0, %c0_i32 : i32, i32
  }
}

</mosaic_0001>

<bundles_post_ra>
// kernel: tpu_custom_call.1
= control target key start
LH: loop header
LB: loop body
LE: loop exit
PB: predicated region body
PF: predicated region fallthrough
CT: control target
= control target key end

     0   :  { %s4043_s0 = inlined_call_operand.<no memory space> [shape: s32[1], index: 0, kind: input, shape index: {}]   ;;  %s4044_s1 = inlined_call_operand.vmem [shape: s32[8,1], index: 1, kind: input, shape index: {}]   ;;  %s4045_s2 = inlined_call_operand.hbm [shape: f32[32,8,76], index: 2, kind: input, shape index: {}]   ;;  %s4046_s3 = inlined_call_operand.hbm [shape: f32[76,128], index: 3, kind: input, shape index: {}]   ;;  %s4047_s4 = inlined_call_operand.vmem [shape: f32[32,128], index: 4, kind: input, shape index: {}]   ;;  %s4048_s5 = inlined_call_operand.vmem [shape: f32[1,128], index: 5, kind: input, shape index: {}]   ;;  %s4049_s6 = inlined_call_operand.vmem [shape: f32[32,10], index: 6, kind: input, shape index: {}]   ;;  %s4050_s7 = inlined_call_operand.vmem [shape: f32[1,10], index: 7, kind: input, shape index: {}]   ;;  %s4051_s8 = inlined_call_operand.hbm [shape: f32[8,10], index: 8, kind: output, shape index: {}]  }
   0x1   :  { %13 = sst [smem:[#allocation5]] %s4043_s0 }
   0x2   :  { %14 = vsyncpa [#allocation7], 0 }
   0x3   :  { %16 = vsyncpa [#allocation7 + $0x1], 0 }
   0x4   :  { %17 = vsyncpa [#allocation10], 0 }
   0x5   :  { %18 = vsyncpa [#allocation8], 0  ;;  %s3402_s29 = smov 0   ;;  %s3404_s30 = smov 0  }
   0x6   :  { %s3406_s9 = smov 0   ;;  %s3408_s10 = smov 0  }
   0x7   :  { %s3410_s11 = smov 0   ;;  %s3412_s12 = smov 0  }
   0x8 LB: > { %s4052_s0 = sadd.s32 4294967295, %s3338_s12   ;;  %p84_p0 = scmp.ne.s32.totalorder %s3322_s30, %s3318_s29  ;;  %s3338_s12 = sphi %s3412_s12, %s24_s12   ;;  %s3334_s11 = sphi %s3410_s11, %s4068_s11   ;;  %s3330_s10 = sphi %s3408_s10, %s4067_s10   ;;  %s3326_s9 = sphi %s3406_s9, %s4066_s9   ;;  %s3322_s30 = sphi %s3404_s30, %s4065_s30   ;;  %s3318_s29 = sphi %s3402_s29, %s4064_s29  }
   0x9   : > { %p3434_p1 = scmp.eq.s32.totalorder %s4052_s0, 0  ;;  %p2563_p2 = scmp.ge.s32.totalorder %s3338_s12, 1 }
   0xa   : > { %p226_p3 = scmp.lt.s32.totalorder %s3338_s12, 3  ;;  %s3340_s16 = smov [#allocation9]  }
   0xb   : > { %p3442_p4 = por %p3434_p1, %p84_p0  ;;  %s245_s17 = sshll.u32 %s3340_s16, 4  ;;  %s246_s17 = int_to_ptr.vmem [resolvable:$true] %s245_s17 }
   0xc   : > { %p3446_p5 = pnand %p2563_p2, %p226_p3  ;;  %s33_s19 = sadd.s32 1, %s3334_s11 }
   0xd   : > { %s3213_s20 = scalar_lea.vmem %s246_s17, 1280  ;;  %p3221_p12 = scmp.lt.s32.totalorder %s246_s17, %s246_s17 }
   0xe   : > { %p2988_p6 = pneg %p3446_p5  ;;  %p3214_p9 = scmp.ne.s32.totalorder %s246_s17, %s3213_s20 }
   0xf   : > { %p3222_p13 = scmp.lt.s32.totalorder %s3213_s20, %s3213_s20 }
  0x10   : > { %p3454_p7 = pnand %p2988_p6, %p3434_p1 }
  0x11   : > { %p3223_p0 = por %p3222_p13, %p3221_p12 }
  0x12   : > { %p3204_p8 = pneg %p3454_p7 }
  0x14   : > { %p3216_p10 = pnand %p3214_p9, %p3204_p8 }
  0x16   : > { %p3217_p11 = pneg %p3216_p10 }
  0x18   : > { %p3224_p2 = pnand %p3223_p0, %p3217_p11 }
  0x1a   : > { %3227 = shalt.err (!%p3224_p2)
}
  0x1b   : > { %s4053_s21 = smov 128   ;;  %s4054_s22 = smov 8  }
  0x1c   : > { %2991 = dma.hbm_to_vmem [thread:$0]  (!%p3454_p7), %s4046_s3, 1280, %s246_s17, [#allocation10], %s4053_s21, %s4053_s21, %s4054_s22  }
  0x1d   : > { %p34_p3 = scmp.ge.s32.totalorder %s33_s19, 2  ;;  %s71_s25 = sadd.s32 1, %s3326_s9 }
  0x1e   : > { %p78_p6 = scmp.ne.s32.totalorder %s3326_s9, %s3322_s30  ;;  %p79_p8 = scmp.eq.s32.totalorder %s3338_s12, 0 }
  0x1f   : > { %s4070_s19 = smov (%p34_p3, %s33_s19), 0  ;;  %p2997_p10 = scmp.lt.s32.totalorder %s3338_s12, 2 }
  0x20   : > { %p80_p9 = por %p79_p8, %p78_p6  ;;  %s66_s26 = ssub.s32 %s3334_s11, %s4070_s19 }
  0x21   : > { %s271_s27 = sand.u32 1, %s3326_s9   ;;  %p69_p11 = scmp.eq.s32.totalorder %s66_s26, 0 }
  0x22   : > { %s2567_s28 = sshll.u32 %s271_s27, 7  ;;  %s2635_s29 = sshll.u32 %s3334_s11, 11 }
  0x23   : > { %s3481_s16 = scalar_select %p69_p11, %s3326_s9, %s71_s25  }
  0x24   : > { %s282_s17 = scalar_lea.hbm %s4045_s2, %s2635_s29  ;;  %s275_s23 = scalar_lea.vmem [#allocation6], %s2567_s28 }
  0x25   : > { %s283_s24 = sshll.u32 %s275_s23, 4  ;;  %p3486_p7 = pnand %p2997_p10, %p80_p9  ;;  %s284_s24 = int_to_ptr.vmem [resolvable:$true] %s283_s24 }
  0x26   : > { %s272_s21 = scalar_lea.sflag [#allocation7], %s271_s27  ;;  %s3241_s26 = scalar_lea.vmem %s284_s24, 2048 }
  0x27   : > { %p3230_p12 = pneg %p3486_p7  ;;  %p3242_p13 = scmp.ne.s32.totalorder %s284_s24, %s3241_s26 }
  0x28   : > { %s3343_s25 = smov [#allocation6]  }
  0x29   : > { %p3244_p0 = pnand %p3242_p13, %p3230_p12  ;;  %s3246_s22 = sshll.u32 %s3343_s25, 4  ;;  %s3247_s22 = int_to_ptr.vmem [resolvable:$false] %s3246_s22 }
  0x2a   : > { %s3248_s18 = scalar_lea.vmem %s3247_s22, 4096  ;;  %p3249_p3 = scmp.lt.s32.totalorder %s284_s24, %s3247_s22 }
  0x2b   : > { %p3245_p2 = pneg %p3244_p0  ;;  %p3250_p6 = scmp.lt.s32.totalorder %s3248_s18, %s3241_s26 }
  0x2d   : > { %p3251_p8 = por %p3250_p6, %p3249_p3 }
  0x2f   : > { %p3252_p9 = pnand %p3251_p8, %p3245_p2 }
  0x31   : > { %3255 = shalt.err (!%p3252_p9)
}
  0x32   : > { %s4060_s28 = smov 8   ;;  %s4061_s29 = smov 128  }
  0x33   : > { %2995 = dma.hbm_to_vmem [thread:$0]  (!%p3486_p7), %s282_s17, 2048, %s284_s24, %s272_s21, %s4061_s29, %s4061_s29, %s4060_s28  }
  0x34   : > { %295 = sbr.rel (%p3446_p5) target bundleno = 11402 (0x2c8a), region = 48  ;;  %s297_s27 = sand.u32 (!%p3446_p5), 1, %s3322_s30  }
  0x35   : > { %s2571_s20 = sshll.u32 (!%p3446_p5), %s297_s27, 7  ;;  %s298_s23 = scalar_lea.sflag (!%p3446_p5), [#allocation7], %s297_s27 }
  0x36   : > { %s3500_s25 = scalar_lea.vmem (!%p3446_p5), [#allocation6], %s2571_s20 }
  0x39   : > { %3305 = dma.done.wait (%p3442_p4), %s298_s23, 2048  }
  0x3a   : > { %3307 = vsyncadd (%p3442_p4), %s298_s23, 4294965248 }
  0x3b   : > { %3309 = dma.done.wait (%p3434_p1), [#allocation10], 1280  }
  0x3c   : > { %3311 = vsyncadd (%p3434_p1), [#allocation10], 4294966016  ;;  %s3510_s0 = sld [smem:[#allocation5]]  ;;  %p2573_p5 = scmp.ne.s32.totalorder %s3330_s10, 0 }
  0x3e   : > { %344 = sbr.rel (%p2573_p5) target bundleno = 69 (0x45), region = 60 }
  0x43   : > { %vm345_vm0 = vcmask 261120   ;;  %v3344_v0 = vmov 0.0  }
  0x44   : > { %346 = vst.msk [vmem:[#allocation2] sm:$0xff] %vm345_vm0, %v3344_v0  ;;  %347 = vst.msk [vmem:[#allocation3] sm:$0xff] %vm345_vm0, %v3344_v0 }
  0x45 PF: > { %p2574_p10 = scmp.ge.s32.totalorder %s3330_s10, %s3510_s0 }
  0x46   : > { %s3348_s29 = smov (!%p2574_p10), 64   ;;  %s3349_s27 = smov (!%p2574_p10), 32  }
  0x47   : > { %351 = sbr.rel (%p2574_p10) target bundleno = 11142 (0x2b86), region = 64  ;;  %s3584_s20 = sshll.u32 (!%p2574_p10), %s3330_s10, 4 }
  0x48   : > { %s3350_s14 = smov (!%p2574_p10), 96   ;;  %s806_s15 = sadd.s32 (!%p2574_p10), 1, %s3584_s20 }
  0x49   : > { %s916_s21 = sadd.s32 (!%p2574_p10), 2, %s3584_s20  ;;  %s1026_s22 = sadd.s32 (!%p2574_p10), 3, %s3584_s20 }
  0x4a   : > { %s1136_s17 = sadd.s32 (!%p2574_p10), 4, %s3584_s20  ;;  %s1246_s24 = sadd.s32 (!%p2574_p10), 5, %s3584_s20 }
  0x4b   : > { %s1466_s26 = sadd.s32 (!%p2574_p10), 7, %s3584_s20  ;;  %s1576_s18 = sadd.s32 (!%p2574_p10), 8, %s3584_s20 }
  0x4c   : > { %v377_v1 = vld [vmem:[#allocation9 + $0x48] sm:$0xf]  ;;  %vm434_vm1 = vcmask 1043456   ;;  %v376_v2 = vld [vmem:[#allocation9 + $0x40] sm:$0xff]  ;;  %v3345_v3 = vmov 0.0   ;;  %v375_v4 = vld [vmem:[#allocation9 + $0x38] sm:$0xff]  ;;  %v694_v33 = vstv %s3584_s20  ;;  %v807_v53 = vstv %s806_s15 }
  0x4d   : > { %2747 = vmatprep.subr.msk.mxu0 %vm434_vm1, %v377_v1  ;;  %2791 = vmatprep.subr.mxu1 %v3345_v3  ;;  %v3519_v5 = vld [vmem:[%s4047_s4 + $0x18] sm:$0xff]  ;;  %vm3346_vm2 = vmmov 0   ;;  %v3527_v6 = vld [vmem:[%s4047_s4 + $0x10] sm:$0xff]  ;;  %v374_v7 = vld [vmem:[#allocation9 + $0x30] sm:$0xff]  ;;  %vm385_vm3 = vcmask 621568   ;;  %vm591_vm4 = vcmask 261120  }
  0x4e   : > { %2748 = vmatpush3.msk.msra.mxu0 %vm434_vm1, %v377_v1  ;;  %2799 = vmatprep.mubr.msk.f32.mxu1 %vm3346_vm2, %v3345_v3  ;;  %v352_v8 = vld [vmem:[%s3500_s25] sm:$0xff]  ;;  %v3535_v9 = vld [vmem:[%s4047_s4 + $0x8] sm:$0xff]  ;;  %v373_v10 = vld [vmem:[#allocation9 + $0x28] sm:$0xff]  ;;  %v3347_v26 = vmov 0   ;;  %s1906_s23 = sadd.s32 11, %s3584_s20 }
  0x4f   : > { %2749 = vmatprep.subr.mxu0 %v376_v2  ;;  %2792 = vmatpush3.msra.mxu1 %v3519_v5  ;;  %v3542_v11 = vld [vmem:[%s4047_s4] sm:$0xff]  ;;  %v372_v12 = vld [vmem:[#allocation9 + $0x20] sm:$0xff]  ;;  %v371_v14 = vld [vmem:[#allocation9 + $0x18] sm:$0xff] }
  0x50   : > { %2750 = vmatpush3.msra.mxu0 %v376_v2  ;;  %2793 = vmatprep.subr.mxu1 %v3345_v3  ;;  %v3545_v13 = vld [vmem:[#allocation2] sm:$0xff]  ;;  %v369_v16 = vld [vmem:[#allocation9 + $0x8] sm:$0xff]  ;;  %v368_v17 = vld [vmem:[#allocation9] sm:$0xff] }
  0x51   : > { %2751 = vmatprep.subr.mxu0 %v375_v4  ;;  %2794 = vmatpush3.msra.mxu1 %v3527_v6  ;;  %v370_v15 = vld [vmem:[#allocation9 + $0x10] sm:$0xff]  ;;  %v353_v18 = vld [vmem:[%s3500_s25 + $0x8] sm:$0xff]  ;;  %v590_v28 = vld [vmem:[#allocation3] sm:$0xff] }
  0x52   : > { %2752 = vmatpush3.msra.mxu0 %v375_v4  ;;  %2795 = vmatprep.subr.mxu1 %v3345_v3  ;;  %v3576_v22 = vld [vmem:[%s4048_s5] ss:$0 sm:$0xff]  ;;  %v355_v4 = vld [vmem:[%s3500_s25 + $0x18] sm:$0xff] }
  0x53   : > { %2753 = vmatprep.subr.mxu0 %v374_v7  ;;  %2767 = vmatprep.mubr.msk.f32.mxu0 %vm385_vm3, %v352_v8  ;;  %v3589_v32 = vld [vmem:[%s4044_s1] sm:$0xff] }
  0x54   : > { %2754 = vmatpush3.msra.mxu0 %v374_v7  ;;  %2796 = vmatpush3.msra.mxu1 %v3535_v9  ;;  %vm695_vm5 = vcmp.lt.s32.totalorder %v694_v33, %v3589_v32  ;;  %vm808_vm7 = vcmp.lt.s32.totalorder %v807_v53, %v3589_v32  ;;  %v354_v2 = vld [vmem:[%s3500_s25 + $0x10] sm:$0xff] }
  0x55   : > { %2755 = vmatprep.subr.mxu0 %v373_v10  ;;  %2797 = vmatprep.subr.mxu1 %v3345_v3  ;;  %v696_v37 = vsel %vm695_vm5, 1, %v3347_v26  ;;  %v809_v55 = vsel %vm808_vm7, 1, %v3347_v26 }
  0x56   : > { %2756 = vmatpush3.msra.mxu0 %v373_v10  ;;  %2798 = vmatpush3.msra.mxu1 %v3542_v11 }
  0x57   : > { %2757 = vmatprep.subr.mxu0 %v372_v12  ;;  %2800 = vmatmul.mubr.msk.f32.vlgmr.msra.gmra.mxu1 %vm591_vm4, %v3545_v13 }
  0x58   : > { %2758 = vmatpush3.msra.mxu0 %v372_v12  ;;  %2802 = vmatprep.subr.mxu1 %v3345_v3 }
  0x59   : > { %2759 = vmatprep.subr.mxu0 %v371_v14  ;;  %2803 = vmatpush3.msra.mxu1 %v3519_v5 }
  0x5a   : > { %2760 = vmatpush3.msra.mxu0 %v371_v14  ;;  %2804 = vmatprep.subr.mxu1 %v3345_v3 }
  0x5b   : > { %2761 = vmatprep.subr.mxu0 %v370_v15  ;;  %2805 = vmatpush3.msra.mxu1 %v3527_v6 }
  0x5c   : > { %2762 = vmatpush3.msra.mxu0 %v370_v15  ;;  %2806 = vmatprep.subr.mxu1 %v3345_v3 }
  0x5d   : > { %2763 = vmatprep.subr.mxu0 %v369_v16  ;;  %2807 = vmatpush3.msra.mxu1 %v3535_v9 }
  0x5e   : > { %2764 = vmatpush3.msra.mxu0 %v369_v16  ;;  %2808 = vmatprep.subr.mxu1 %v3345_v3 }
  0x5f   : > { %2765 = vmatprep.subr.mxu0 %v368_v17  ;;  %2809 = vmatpush3.msra.mxu1 %v3542_v11 }
  0x60   : > { %2766 = vmatpush3.msra.mxu0 %v368_v17  ;;  %2810 = vmatprep.mubr.msk.f32.mxu1 %vm3346_vm2, %v3345_v3 }
  0x61   : > { %2768 = vmatmul.mubr.msk.f32.vlgmr.msra.gmra.mxu0 %vm385_vm3, %v353_v18  ;;  %2813 = vmatprep.subr.mxu1 %v3345_v3 }
  0x62   : > { %2857 = vmatprep.subr.mxu0 %v3345_v3  ;;  %3062 = vset.pattern.permute.xlu1 %v3347_v26 }
  0x63   : > { %2858 = vmatpush3.msra.mxu0 %v3519_v5  ;;  %3063 = vset.pattern.permute.xlu0 %v3347_v26 }
  0x64   : > { %2859 = vmatprep.subr.mxu0 %v3345_v3  ;;  %2770 = vmatprep.mubr.msk.f32.mxu0 %vm385_vm3, %v354_v2 }
  0x65   : > { %2860 = vmatpush3.msra.mxu0 %v3527_v6 }
  0x66   : > { %2861 = vmatprep.subr.mxu0 %v3345_v3  ;;  %2771 = vmatmul.mubr.msk.f32.gmra.mxu0 %vm385_vm3, %v355_v4 }
  0x67   : > { %2862 = vmatpush3.msra.mxu0 %v3535_v9 }
  0x68   : > { %2863 = vmatprep.subr.mxu0 %v3345_v3 }
  0x69   : > { %2864 = vmatpush3.msra.mxu0 %v3542_v11 }
  0x6a   : > { %2879 = vmatprep.subr.mxu0 %v3345_v3 }
 0x117   : > { %v661_v19 = vpop.f32.mrf.mxu1 }
 0x119   : > { %v2801_v20 = vpop.f32.mrf.mxu1 }
 0x121   : > { %v2769_v21 = vpop.f32.mrf.mxu0 }
 0x122   : > { %v510_v49 = vadd.f32 %v2769_v21, %v3576_v22  ;;  %v917_v21 = vstv %s916_s21  ;;  %s1686_s21 = sadd.s32 9, %s3584_s20 }
 0x123   : > { %v504_v23 = vpop.f32.mrf.mxu0  ;;  %vm918_vm9 = vcmp.lt.s32.totalorder %v917_v21, %v3589_v32 }
 0x124   : > { %v505_v24 = vadd.f32 %v3576_v22, %v504_v23 }
 0x126   : > { %v665_v25 = vadd.f32 %v661_v19, %v505_v24  ;;  %v2772_v15 = vpop.f32.mrf.mxu0  ;;  %v919_v24 = vsel %vm918_vm9, 1, %v3347_v26 }
 0x128   : > { %3064 = vtanh.f32 %v665_v25  ;;  %v2595_v29 = vmul.f32 -1.442695, %v665_v25  ;;  %v514_v16 = vpop.f32.mrf.mxu0 }
 0x129   : > { %v515_v17 = vadd.f32 %v3576_v22, %v514_v16 }
 0x12a   : > { %3066 = vpow2.f32 %v2595_v29 }
 0x135   : > { %v3065_v27 = vpop.eup %3064 }
 0x136   : > { %679 = vrot.lane.b32.xlu0 %v3065_v27, %s3348_s29 }
 0x137   : > { %v3067_v30 = vpop.eup %3066 }
 0x138   : > { %v669_v31 = vadd.f32 1.0, %v3067_v30 }
 0x13a   : > { %674 = vrot.lane.b32.xlu0 %v590_v28, %s3349_s27  ;;  %3068 = vrcp.f32 %v669_v31 }
 0x147   : > { %v3069_v34 = vpop.eup %3068 }
 0x1a8   : > { %v680_v35 = vpop.permute.xlu0 %679 }
 0x1a9   : > { %v682_v36 = vmul.f32 %v3069_v34, %v680_v35 }
 0x1ab   : > { %684 = vrot.lane.b32.xlu1 %v682_v36, %s3349_s27 }
 0x1ac   : > { %v675_v38 = vpop.permute.xlu0 %674 }
 0x1ad   : > { %v677_v39 = vmul.f32 %v3069_v34, %v675_v38 }
 0x1af   : > { %698 = vperm.xlu1 %3062, %v696_v37  }
 0x1b3   : > { %701 = vrot.lane.b32.xlu1 %v3545_v13, %s3350_s14 }
 0x21d   : > { %v685_v40 = vpop.permute.xlu1 %684 }
 0x21e   : > { %v687_v41 = vadd.f32 %v685_v40, %v677_v39 }
 0x220   : > { %3070 = vtanh.f32 %v687_v41 }
 0x22a   : > { %v699_v43 = vpop.permute.xlu1 %698 }
 0x22b   : > { %vm700_vm6 = vcmp.eq.s32.totalorder %v699_v43, 1  ;;  %v520_v43 = vadd.f32 %v2772_v15, %v3576_v22  ;;  %v1137_v15 = vstv %s1136_s17  ;;  %s2236_s17 = sadd.s32 14, %s3584_s20 }
 0x22c   : > { %v705_v62 = vsel %vm700_vm6, %v687_v41, %v675_v38  ;;  %vm1138_vm13 = vcmp.lt.s32.totalorder %v1137_v15, %v3589_v32 }
 0x22d   : > { %v3071_v42 = vpop.eup %3070 }
 0x22e   : > { %690 = vrot.lane.b32.xlu0 %v3071_v42, %s3348_s29  ;;  %v702_v45 = vpop.permute.xlu1 %701 }
 0x2a0   : > { %v691_v44 = vpop.permute.xlu0 %690 }
 0x2a1   : > { %v693_v46 = vmul.f32 %v3069_v34, %v691_v44 }
 0x2a3   : > { %v704_v47 = vsel %vm700_vm6, %v693_v46, %v702_v45 }
 0x2a4   : > { %707 = vrot.lane.b32.xlu0 %v704_v47, %s3349_s27 }
 0x316   : > { %v708_v48 = vpop.permute.xlu0 %707 }
 0x317   : > { %2811 = vmatmul.mubr.msk.f32.vlgmr.msra.gmra.mxu1 %vm591_vm4, %v708_v48 }
 0x318   : > { %2814 = vmatpush3.msra.mxu1 %v3519_v5  ;;  %2821 = vmatprep.mubr.msk.f32.mxu1 %vm3346_vm2, %v3345_v3 }
 0x319   : > { %2815 = vmatprep.subr.mxu1 %v3345_v3 }
 0x31a   : > { %2816 = vmatpush3.msra.mxu1 %v3527_v6 }
 0x31b   : > { %2817 = vmatprep.subr.mxu1 %v3345_v3 }
 0x31c   : > { %2818 = vmatpush3.msra.mxu1 %v3535_v9 }
 0x31d   : > { %2819 = vmatprep.subr.mxu1 %v3345_v3 }
 0x31e   : > { %2820 = vmatpush3.msra.mxu1 %v3542_v11 }
 0x31f   : > { %2824 = vmatprep.subr.mxu1 %v3345_v3 }
 0x3d7   : > { %v777_v50 = vpop.f32.mrf.mxu1 }
 0x3d8   : > { %v781_v51 = vadd.f32 %v777_v50, %v510_v49 }
 0x3d9   : > { %v2812_v52 = vpop.f32.mrf.mxu1 }
 0x3da   : > { %3072 = vtanh.f32 %v781_v51  ;;  %v2597_v56 = vmul.f32 -1.442695, %v781_v51 }
 0x3dc   : > { %3074 = vpow2.f32 %v2597_v56 }
 0x3e7   : > { %v3073_v54 = vpop.eup %3072 }
 0x3e8   : > { %791 = vrot.lane.b32.xlu1 %v3073_v54, %s3348_s29 }
 0x3e9   : > { %v3075_v57 = vpop.eup %3074 }
 0x3ea   : > { %v785_v58 = vadd.f32 1.0, %v3075_v57 }
 0x3ec   : > { %811 = vperm.xlu1 %3062, %v809_v55   ;;  %3076 = vrcp.f32 %v785_v58 }
 0x3f9   : > { %v3077_v59 = vpop.eup %3076 }
 0x3fa   : > { %v789_v63 = vmul.f32 %v3077_v59, %v705_v62 }
 0x45a   : > { %v792_v60 = vpop.permute.xlu1 %791 }
 0x45b   : > { %v794_v61 = vmul.f32 %v3077_v59, %v792_v60  ;;  %v356_v60 = vld [vmem:[%s3500_s25 + $0x20] sm:$0xff] }
 0x45c   : > { %2773 = vmatprep.mubr.msk.f32.mxu0 %vm385_vm3, %v356_v60  ;;  %v364_v60 = vld [vmem:[%s3500_s25 + $0x60] sm:$0xff] }
 0x45d   : > { %796 = vrot.lane.b32.xlu0 %v794_v61, %s3349_s27  ;;  %v357_v61 = vld [vmem:[%s3500_s25 + $0x28] sm:$0xff] }
 0x45e   : > { %2774 = vmatmul.mubr.msk.f32.gmra.mxu0 %vm385_vm3, %v357_v61 }
 0x467   : > { %v812_v8 = vpop.permute.xlu1 %811 }
 0x468   : > { %vm813_vm8 = vcmp.eq.s32.totalorder %v812_v8, 1 }
 0x4cf   : > { %v797_v0 = vpop.permute.xlu0 %796 }
 0x4d0   : > { %v799_v1 = vadd.f32 %v797_v0, %v789_v63 }
 0x4d2   : > { %3078 = vtanh.f32 %v799_v1  ;;  %v815_v33 = vsel %vm813_vm8, %v799_v1, %v705_v62 }
 0x4df   : > { %v3079_v7 = vpop.eup %3078 }
 0x4e0   : > { %802 = vrot.lane.b32.xlu0 %v3079_v7, %s3348_s29 }
 0x51e   : > { %v2775_v7 = vpop.f32.mrf.mxu0 }
 0x520   : > { %v524_v8 = vpop.f32.mrf.mxu0 }
 0x552   : > { %v803_v10 = vpop.permute.xlu0 %802 }
 0x553   : > { %v805_v12 = vmul.f32 %v3077_v59, %v803_v10  ;;  %v525_v10 = vadd.f32 %v3576_v22, %v524_v8 }
 0x555   : > { %v814_v13 = vsel %vm813_vm8, %v805_v12, %v704_v47  ;;  %v1027_v47 = vstv %s1026_s22  ;;  %s2126_s22 = sadd.s32 13, %s3584_s20 }
 0x556   : > { %817 = vrot.lane.b32.xlu1 %v814_v13, %s3349_s27  ;;  %vm1028_vm11 = vcmp.lt.s32.totalorder %v1027_v47, %v3589_v32 }
 0x557   : > { %v1029_v49 = vsel %vm1028_vm11, 1, %v3347_v26 }
 0x5c8   : > { %v818_v14 = vpop.permute.xlu1 %817 }
 0x5c9   : > { %2822 = vmatmul.mubr.msk.f32.vlgmr.msra.gmra.mxu1 %vm591_vm4, %v818_v14 }
 0x5ca   : > { %2825 = vmatpush3.msra.mxu1 %v3519_v5  ;;  %2832 = vmatprep.mubr.msk.f32.mxu1 %vm3346_vm2, %v3345_v3 }
 0x5cb   : > { %2826 = vmatprep.subr.mxu1 %v3345_v3 }
 0x5cc   : > { %2827 = vmatpush3.msra.mxu1 %v3527_v6 }
 0x5cd   : > { %2828 = vmatprep.subr.mxu1 %v3345_v3 }
 0x5ce   : > { %2829 = vmatpush3.msra.mxu1 %v3535_v9 }
 0x5cf   : > { %2830 = vmatprep.subr.mxu1 %v3345_v3 }
 0x5d0   : > { %2831 = vmatpush3.msra.mxu1 %v3542_v11 }
 0x5d1   : > { %2835 = vmatprep.subr.mxu1 %v3345_v3 }
 0x689   : > { %v887_v18 = vpop.f32.mrf.mxu1 }
 0x68a   : > { %v891_v19 = vadd.f32 %v887_v18, %v515_v17  ;;  %v1139_v17 = vsel %vm1138_vm13, 1, %v3347_v26 }
 0x68b   : > { %v2823_v20 = vpop.f32.mrf.mxu1 }
 0x68c   : > { %3080 = vtanh.f32 %v891_v19  ;;  %v2599_v25 = vmul.f32 -1.442695, %v891_v19 }
 0x68e   : > { %3082 = vpow2.f32 %v2599_v25 }
 0x699   : > { %v3081_v23 = vpop.eup %3080 }
 0x69a   : > { %901 = vrot.lane.b32.xlu0 %v3081_v23, %s3348_s29 }
 0x69b   : > { %v3083_v27 = vpop.eup %3082 }
 0x69c   : > { %v895_v28 = vadd.f32 1.0, %v3083_v27 }
 0x69e   : > { %921 = vperm.xlu0 %3063, %v919_v24   ;;  %3084 = vrcp.f32 %v895_v28 }
 0x6ab   : > { %v3085_v29 = vpop.eup %3084 }
 0x6ac   : > { %v899_v34 = vmul.f32 %v3085_v29, %v815_v33 }
 0x70c   : > { %v902_v30 = vpop.permute.xlu0 %901 }
 0x70d   : > { %v904_v31 = vmul.f32 %v3085_v29, %v902_v30 }
 0x70f   : > { %906 = vrot.lane.b32.xlu1 %v904_v31, %s3349_s27 }
 0x719   : > { %v922_v38 = vpop.permute.xlu0 %921 }
 0x71a   : > { %vm923_vm10 = vcmp.eq.s32.totalorder %v922_v38, 1 }
 0x781   : > { %v907_v35 = vpop.permute.xlu1 %906 }
 0x782   : > { %v909_v36 = vadd.f32 %v907_v35, %v899_v34 }
 0x784   : > { %3086 = vtanh.f32 %v909_v36  ;;  %v925_v56 = vsel %vm923_vm10, %v909_v36, %v815_v33 }
 0x791   : > { %v3087_v37 = vpop.eup %3086 }
 0x792   : > { %912 = vrot.lane.b32.xlu1 %v3087_v37, %s3348_s29  ;;  %v530_v37 = vadd.f32 %v2775_v7, %v3576_v22 }
 0x804   : > { %v913_v39 = vpop.permute.xlu1 %912 }
 0x805   : > { %v915_v40 = vmul.f32 %v3085_v29, %v913_v39 }
 0x807   : > { %v924_v41 = vsel %vm923_vm10, %v915_v40, %v814_v13 }
 0x808   : > { %927 = vrot.lane.b32.xlu1 %v924_v41, %s3349_s27 }
 0x87a   : > { %v928_v42 = vpop.permute.xlu1 %927 }
 0x87b   : > { %2833 = vmatmul.mubr.msk.f32.vlgmr.msra.gmra.mxu1 %vm591_vm4, %v928_v42 }
 0x87c   : > { %2836 = vmatpush3.msra.mxu1 %v3519_v5  ;;  %2843 = vmatprep.mubr.msk.f32.mxu1 %vm3346_vm2, %v3345_v3 }
 0x87d   : > { %2837 = vmatprep.subr.mxu1 %v3345_v3 }
 0x87e   : > { %2838 = vmatpush3.msra.mxu1 %v3527_v6 }
 0x87f   : > { %2839 = vmatprep.subr.mxu1 %v3345_v3 }
 0x880   : > { %2840 = vmatpush3.msra.mxu1 %v3535_v9 }
 0x881   : > { %2841 = vmatprep.subr.mxu1 %v3345_v3 }
 0x882   : > { %2842 = vmatpush3.msra.mxu1 %v3542_v11 }
 0x883   : > { %2846 = vmatprep.subr.mxu1 %v3345_v3 }
 0x93b   : > { %v997_v44 = vpop.f32.mrf.mxu1 }
 0x93c   : > { %v1001_v45 = vadd.f32 %v997_v44, %v520_v43 }
 0x93d   : > { %v2834_v46 = vpop.f32.mrf.mxu1 }
 0x93e   : > { %3088 = vtanh.f32 %v1001_v45  ;;  %v2601_v50 = vmul.f32 -1.442695, %v1001_v45 }
 0x940   : > { %3090 = vpow2.f32 %v2601_v50 }
 0x94b   : > { %v3089_v48 = vpop.eup %3088 }
 0x94c   : > { %1011 = vrot.lane.b32.xlu0 %v3089_v48, %s3348_s29 }
 0x94d   : > { %v3091_v51 = vpop.eup %3090 }
 0x94e   : > { %v1005_v52 = vadd.f32 1.0, %v3091_v51 }
 0x950   : > { %1031 = vperm.xlu0 %3063, %v1029_v49   ;;  %3092 = vrcp.f32 %v1005_v52 }
 0x95d   : > { %v3093_v53 = vpop.eup %3092 }
 0x95e   : > { %v1009_v57 = vmul.f32 %v3093_v53, %v925_v56 }
 0x9be   : > { %v1012_v54 = vpop.permute.xlu0 %1011 }
 0x9bf   : > { %v1014_v55 = vmul.f32 %v3093_v53, %v1012_v54  ;;  %v358_v54 = vld [vmem:[%s3500_s25 + $0x30] sm:$0xff] }
 0x9c0   : > { %2776 = vmatprep.mubr.msk.f32.mxu0 %vm385_vm3, %v358_v54 }
 0x9c1   : > { %1016 = vrot.lane.b32.xlu1 %v1014_v55, %s3349_s27  ;;  %v359_v55 = vld [vmem:[%s3500_s25 + $0x38] sm:$0xff] }
 0x9c2   : > { %2777 = vmatmul.mubr.msk.f32.gmra.mxu0 %vm385_vm3, %v359_v55 }
 0x9cb   : > { %v1032_v63 = vpop.permute.xlu0 %1031 }
 0x9cc   : > { %vm1033_vm12 = vcmp.eq.s32.totalorder %v1032_v63, 1  ;;  %v366_v63 = vld [vmem:[%s3500_s25 + $0x70] sm:$0xff] }
 0xa33   : > { %v1017_v58 = vpop.permute.xlu1 %1016 }
 0xa34   : > { %v1019_v59 = vadd.f32 %v1017_v58, %v1009_v57  ;;  %v361_v57 = vld [vmem:[%s3500_s25 + $0x48] sm:$0xff]  ;;  %v362_v58 = vld [vmem:[%s3500_s25 + $0x50] sm:$0xff] }
 0xa36   : > { %3094 = vtanh.f32 %v1019_v59  ;;  %v1035_v25 = vsel %vm1033_vm12, %v1019_v59, %v925_v56  ;;  %v360_v56 = vld [vmem:[%s3500_s25 + $0x40] sm:$0xff]  ;;  %v363_v59 = vld [vmem:[%s3500_s25 + $0x58] sm:$0xff] }
 0xa37   : > { %2779 = vmatprep.mubr.msk.f32.mxu0 %vm385_vm3, %v360_v56 }
 0xa38   : > { %2780 = vmatmul.mubr.msk.f32.gmra.mxu0 %vm385_vm3, %v361_v57 }
 0xa39   : > { %2782 = vmatprep.mubr.msk.f32.mxu0 %vm385_vm3, %v362_v58 }
 0xa3c   : > { %2783 = vmatmul.mubr.msk.f32.gmra.mxu0 %vm385_vm3, %v363_v59 }
 0xa3d   : > { %2785 = vmatprep.mubr.msk.f32.mxu0 %vm385_vm3, %v364_v60 }
 0xa43   : > { %v3095_v62 = vpop.eup %3094 }
 0xa44   : > { %1022 = vrot.lane.b32.xlu1 %v3095_v62, %s3348_s29  ;;  %v365_v62 = vld [vmem:[%s3500_s25 + $0x68] sm:$0xff] }
 0xa45   : > { %2786 = vmatmul.mubr.msk.f32.gmra.mxu0 %vm385_vm3, %v365_v62 }
 0xa46   : > { %2788 = vmatprep.mubr.msk.f32.mxu0 %vm385_vm3, %v366_v63 }
 0xab6   : > { %v1023_v0 = vpop.permute.xlu1 %1022 }
 0xab7   : > { %v1025_v1 = vmul.f32 %v3093_v53, %v1023_v0  ;;  %v367_v0 = vld [vmem:[%s3500_s25 + $0x78] sm:$0xff]  ;;  %s1356_s25 = sadd.s32 6, %s3584_s20 }
 0xab8   : > { %2789 = vmatmul.mubr.msk.f32.gmra.mxu0 %vm385_vm3, %v367_v0 }
 0xab9   : > { %v1034_v2 = vsel %vm1033_vm12, %v1025_v1, %v924_v41  ;;  %v1247_v41 = vstv %s1246_s24  ;;  %2865 = vmatprep.mubr.msk.f32.mxu0 %vm3346_vm2, %v3345_v3  ;;  %s2346_s24 = sadd.s32 15, %s3584_s20 }
 0xaba   : > { %1037 = vrot.lane.b32.xlu0 %v1034_v2, %s3349_s27  ;;  %vm1248_vm15 = vcmp.lt.s32.totalorder %v1247_v41, %v3589_v32 }
 0xabb   : > { %v1249_v43 = vsel %vm1248_vm15, 1, %v3347_v26 }
 0xb2c   : > { %v1038_v4 = vpop.permute.xlu0 %1037 }
 0xb2d   : > { %2844 = vmatmul.mubr.msk.f32.vlgmr.msra.gmra.mxu1 %vm591_vm4, %v1038_v4 }
 0xb2e   : > { %2847 = vmatpush3.msra.mxu1 %v3519_v5  ;;  %2854 = vmatprep.mubr.msk.f32.mxu1 %vm3346_vm2, %v3345_v3 }
 0xb2f   : > { %2848 = vmatprep.subr.mxu1 %v3345_v3 }
 0xb30   : > { %2849 = vmatpush3.msra.mxu1 %v3527_v6 }
 0xb31   : > { %2850 = vmatprep.subr.mxu1 %v3345_v3 }
 0xb32   : > { %2851 = vmatpush3.msra.mxu1 %v3535_v9 }
 0xb33   : > { %2852 = vmatprep.subr.mxu1 %v3345_v3 }
 0xb34   : > { %2853 = vmatpush3.msra.mxu1 %v3542_v11 }
 0xb35   : > { %2868 = vmatprep.subr.mxu1 %v3345_v3 }
 0xbed   : > { %v1107_v12 = vpop.f32.mrf.mxu1 }
 0xbee   : > { %v1111_v13 = vadd.f32 %v1107_v12, %v525_v10  ;;  %v2778_v10 = vpop.f32.mrf.mxu0 }
 0xbef   : > { %v2845_v14 = vpop.f32.mrf.mxu1 }
 0xbf0   : > { %3096 = vtanh.f32 %v1111_v13  ;;  %v2603_v18 = vmul.f32 -1.442695, %v1111_v13  ;;  %v534_v12 = vpop.f32.mrf.mxu0 }
 0xbf2   : > { %3098 = vpow2.f32 %v2603_v18  ;;  %v3756_v13 = vpop.f32.mrf.mxu0 }
 0xbf4   : > { %v3758_v14 = vpop.f32.mrf.mxu0 }
 0xbf6   : > { %v3760_v15 = vpop.f32.mrf.mxu0 }
 0xbfd   : > { %v3097_v16 = vpop.eup %3096 }
 0xbfe   : > { %1121 = vrot.lane.b32.xlu1 %v3097_v16, %s3348_s29  ;;  %v3762_v16 = vpop.f32.mrf.mxu0 }
 0xbff   : > { %v3099_v19 = vpop.eup %3098 }
 0xc00   : > { %v1115_v20 = vadd.f32 1.0, %v3099_v19 }
 0xc02   : > { %1141 = vperm.xlu1 %3062, %v1139_v17   ;;  %3100 = vrcp.f32 %v1115_v20  ;;  %v3764_v17 = vpop.f32.mrf.mxu0 }
 0xc04   : > { %v3766_v18 = vpop.f32.mrf.mxu0 }
 0xc06   : > { %v3768_v19 = vpop.f32.mrf.mxu0 }
 0xc08   : > { %v3770_v20 = vpop.f32.mrf.mxu0 }
 0xc0f   : > { %v3101_v21 = vpop.eup %3100 }
 0xc10   : > { %v1119_v27 = vmul.f32 %v3101_v21, %v1035_v25 }
 0xc70   : > { %v1122_v23 = vpop.permute.xlu1 %1121 }
 0xc71   : > { %v1124_v24 = vmul.f32 %v3101_v21, %v1122_v23 }
 0xc73   : > { %1126 = vrot.lane.b32.xlu0 %v1124_v24, %s3349_s27 }
 0xc7d   : > { %v1142_v31 = vpop.permute.xlu1 %1141 }
 0xc7e   : > { %vm1143_vm14 = vcmp.eq.s32.totalorder %v1142_v31, 1 }
 0xce5   : > { %v1127_v28 = vpop.permute.xlu0 %1126 }
 0xce6   : > { %v1129_v29 = vadd.f32 %v1127_v28, %v1119_v27  ;;  %v1357_v27 = vstv %s1356_s25 }
 0xce7   : > { %vm1358_vm1 = vcmp.lt.s32.totalorder %v1357_v27, %v3589_v32 }
 0xce8   : > { %3102 = vtanh.f32 %v1129_v29  ;;  %v3713_v50 = vsel %vm1143_vm14, %v1129_v29, %v1035_v25  ;;  %v1359_v29 = vsel %vm1358_vm1, 1, %v3347_v26 }
 0xcf5   : > { %v3103_v30 = vpop.eup %3102 }
 0xcf6   : > { %1132 = vrot.lane.b32.xlu0 %v3103_v30, %s3348_s29 }
 0xd68   : > { %v1133_v33 = vpop.permute.xlu0 %1132 }
 0xd69   : > { %v1135_v34 = vmul.f32 %v3101_v21, %v1133_v33  ;;  %v535_v21 = vadd.f32 %v3576_v22, %v534_v12 }
 0xd6b   : > { %v3691_v35 = vsel %vm1143_vm14, %v1135_v34, %v1034_v2 }
 0xd6c   : > { %1147 = vrot.lane.b32.xlu1 %v3691_v35, %s3349_s27 }
 0xdde   : > { %v1148_v36 = vpop.permute.xlu1 %1147 }
 0xddf   : > { %2855 = vmatmul.mubr.msk.f32.vlgmr.msra.gmra.mxu1 %vm591_vm4, %v1148_v36 }
 0xde0   : > { %2869 = vmatpush3.msra.mxu1 %v3519_v5  ;;  %2876 = vmatprep.mubr.msk.f32.mxu1 %vm3346_vm2, %v3345_v3 }
 0xde1   : > { %2870 = vmatprep.subr.mxu1 %v3345_v3 }
 0xde2   : > { %2871 = vmatpush3.msra.mxu1 %v3527_v6 }
 0xde3   : > { %2872 = vmatprep.subr.mxu1 %v3345_v3 }
 0xde4   : > { %2873 = vmatpush3.msra.mxu1 %v3535_v9 }
 0xde5   : > { %2874 = vmatprep.subr.mxu1 %v3345_v3 }
 0xde6   : > { %2875 = vmatpush3.msra.mxu1 %v3542_v11 }
 0xde7   : > { %2890 = vmatprep.subr.mxu1 %v3345_v3 }
 0xe9f   : > { %v1217_v38 = vpop.f32.mrf.mxu1 }
 0xea0   : > { %v1221_v39 = vadd.f32 %v1217_v38, %v530_v37 }
 0xea1   : > { %v2856_v40 = vpop.f32.mrf.mxu1 }
 0xea2   : > { %3104 = vtanh.f32 %v1221_v39  ;;  %v2605_v44 = vmul.f32 -1.442695, %v1221_v39 }
 0xea4   : > { %3106 = vpow2.f32 %v2605_v44 }
 0xeaf   : > { %v3105_v42 = vpop.eup %3104 }
 0xeb0   : > { %1231 = vrot.lane.b32.xlu0 %v3105_v42, %s3348_s29 }
 0xeb1   : > { %v3107_v45 = vpop.eup %3106 }
 0xeb2   : > { %v1225_v46 = vadd.f32 1.0, %v3107_v45 }
 0xeb4   : > { %1251 = vperm.xlu0 %3063, %v1249_v43   ;;  %3108 = vrcp.f32 %v1225_v46 }
 0xec1   : > { %v3109_v47 = vpop.eup %3108 }
 0xec2   : > { %v1229_v51 = vmul.f32 %v3109_v47, %v3713_v50 }
 0xf22   : > { %v1232_v48 = vpop.permute.xlu0 %1231 }
 0xf23   : > { %v1234_v49 = vmul.f32 %v3109_v47, %v1232_v48 }
 0xf25   : > { %1236 = vrot.lane.b32.xlu1 %v1234_v49, %s3349_s27 }
 0xf2f   : > { %v1252_v1 = vpop.permute.xlu0 %1251 }
 0xf30   : > { %vm1253_vm0 = vcmp.eq.s32.totalorder %v1252_v1, 1 }
 0xf97   : > { %v1237_v52 = vpop.permute.xlu1 %1236 }
 0xf98   : > { %v3716_v53 = vadd.f32 %v1237_v52, %v1229_v51  ;;  %v1467_v51 = vstv %s1466_s26  ;;  %s1796_s26 = sadd.s32 10, %s3584_s20 }
 0xf99   : > { %vm1468_vm5 = vcmp.lt.s32.totalorder %v1467_v51, %v3589_v32 }
 0xf9a   : > { %3110 = vtanh.f32 %v3716_v53  ;;  %v1255_v37 = vsel %vm1253_vm0, %v3716_v53, %v3713_v50  ;;  %v1469_v53 = vsel %vm1468_vm5, 1, %v3347_v26 }
 0xfa7   : > { %v3111_v61 = vpop.eup %3110 }
 0xfa8   : > { %1242 = vrot.lane.b32.xlu1 %v3111_v61, %s3348_s29 }
0x101a   : > { %v1243_v2 = vpop.permute.xlu1 %1242 }
0x101b   : > { %v1245_v4 = vmul.f32 %v3109_v47, %v1243_v2  ;;  %v540_v47 = vadd.f32 %v2778_v10, %v3576_v22 }
0x101d   : > { %v1254_v7 = vsel %vm1253_vm0, %v1245_v4, %v3691_v35 }
0x101e   : > { %1257 = vrot.lane.b32.xlu0 %v1254_v7, %s3349_s27 }
0x1090   : > { %v1258_v8 = vpop.permute.xlu0 %1257 }
0x1091   : > { %2866 = vmatmul.mubr.msk.f32.vlgmr.msra.gmra.mxu0 %vm591_vm4, %v1258_v8 }
0x1092   : > { %2880 = vmatpush3.msra.mxu0 %v3519_v5  ;;  %2887 = vmatprep.mubr.msk.f32.mxu0 %vm3346_vm2, %v3345_v3 }
0x1093   : > { %2881 = vmatprep.subr.mxu0 %v3345_v3 }
0x1094   : > { %2882 = vmatpush3.msra.mxu0 %v3527_v6 }
0x1095   : > { %2883 = vmatprep.subr.mxu0 %v3345_v3 }
0x1096   : > { %2884 = vmatpush3.msra.mxu0 %v3535_v9 }
0x1097   : > { %2885 = vmatprep.subr.mxu0 %v3345_v3 }
0x1098   : > { %2886 = vmatpush3.msra.mxu0 %v3542_v11 }
0x1099   : > { %2901 = vmatprep.subr.mxu0 %v3345_v3 }
0x1151   : > { %v1327_v23 = vpop.f32.mrf.mxu0 }
0x1152   : > { %v1331_v24 = vadd.f32 %v1327_v23, %v535_v21  ;;  %v1577_v23 = vstv %s1576_s18 }
0x1153   : > { %v2867_v25 = vpop.f32.mrf.mxu0  ;;  %vm1578_vm7 = vcmp.lt.s32.totalorder %v1577_v23, %v3589_v32 }
0x1154   : > { %3112 = vtanh.f32 %v1331_v24  ;;  %v2607_v30 = vmul.f32 -1.442695, %v1331_v24  ;;  %v1579_v24 = vsel %vm1578_vm7, 1, %v3347_v26 }
0x1156   : > { %3114 = vpow2.f32 %v2607_v30 }
0x1161   : > { %v3113_v28 = vpop.eup %3112 }
0x1162   : > { %1341 = vrot.lane.b32.xlu1 %v3113_v28, %s3348_s29 }
0x1163   : > { %v3115_v31 = vpop.eup %3114 }
0x1164   : > { %v1335_v33 = vadd.f32 1.0, %v3115_v31 }
0x1166   : > { %1361 = vperm.xlu1 %3062, %v1359_v29   ;;  %3116 = vrcp.f32 %v1335_v33 }
0x1173   : > { %v3117_v34 = vpop.eup %3116 }
0x1174   : > { %v1339_v38 = vmul.f32 %v3117_v34, %v1255_v37 }
0x11d4   : > { %v1342_v35 = vpop.permute.xlu1 %1341 }
0x11d5   : > { %v1344_v36 = vmul.f32 %v3117_v34, %v1342_v35 }
0x11d7   : > { %1346 = vrot.lane.b32.xlu0 %v1344_v36, %s3349_s27 }
0x11e1   : > { %v1362_v42 = vpop.permute.xlu1 %1361 }
0x11e2   : > { %vm1363_vm3 = vcmp.eq.s32.totalorder %v1362_v42, 1  ;;  %v3831_v42 = vld [vmem:[%s4047_s4 + $0x18] sm:$0xff] }
0x1249   : > { %v1347_v39 = vpop.permute.xlu0 %1346 }
0x124a   : > { %v1349_v40 = vadd.f32 %v1347_v39, %v1339_v38 }
0x124c   : > { %3118 = vtanh.f32 %v1349_v40  ;;  %v1365_v60 = vsel %vm1363_vm3, %v1349_v40, %v1255_v37 }
0x1259   : > { %v3119_v41 = vpop.eup %3118 }
0x125a   : > { %1352 = vrot.lane.b32.xlu0 %v3119_v41, %s3348_s29 }
0x12cc   : > { %v1353_v43 = vpop.permute.xlu0 %1352 }
0x12cd   : > { %v1355_v44 = vmul.f32 %v3117_v34, %v1353_v43  ;;  %v3840_v43 = vld [vmem:[%s4047_s4 + $0x10] sm:$0xff] }
0x12cf   : > { %v1364_v45 = vsel %vm1363_vm3, %v1355_v44, %v1254_v7  ;;  %v550_v44 = vadd.f32 %v3756_v13, %v3576_v22 }
0x12d0   : > { %1367 = vrot.lane.b32.xlu1 %v1364_v45, %s3349_s27 }
0x1342   : > { %v1368_v46 = vpop.permute.xlu1 %1367 }
0x1343   : > { %2877 = vmatmul.mubr.msk.f32.vlgmr.msra.gmra.mxu1 %vm591_vm4, %v1368_v46 }
0x1344   : > { %2891 = vmatpush3.msra.mxu1 %v3519_v5  ;;  %2898 = vmatprep.mubr.msk.f32.mxu1 %vm3346_vm2, %v3345_v3 }
0x1345   : > { %2892 = vmatprep.subr.mxu1 %v3345_v3 }
0x1346   : > { %2893 = vmatpush3.msra.mxu1 %v3527_v6 }
0x1347   : > { %2894 = vmatprep.subr.mxu1 %v3345_v3 }
0x1348   : > { %2895 = vmatpush3.msra.mxu1 %v3535_v9 }
0x1349   : > { %2896 = vmatprep.subr.mxu1 %v3345_v3 }
0x134a   : > { %2897 = vmatpush3.msra.mxu1 %v3542_v11 }
0x134b   : > { %2912 = vmatprep.subr.mxu1 %v3345_v3 }
0x1403   : > { %v1437_v48 = vpop.f32.mrf.mxu1 }
0x1404   : > { %v1441_v49 = vadd.f32 %v1437_v48, %v540_v47  ;;  %v1687_v48 = vstv %s1686_s21  ;;  %s2016_s21 = sadd.s32 12, %s3584_s20 }
0x1405   : > { %v2878_v50 = vpop.f32.mrf.mxu1  ;;  %vm1688_vm9 = vcmp.lt.s32.totalorder %v1687_v48, %v3589_v32 }
0x1406   : > { %3120 = vtanh.f32 %v1441_v49  ;;  %v2609_v54 = vmul.f32 -1.442695, %v1441_v49 }
0x1408   : > { %3122 = vpow2.f32 %v2609_v54 }
0x1413   : > { %v3121_v52 = vpop.eup %3120 }
0x1414   : > { %1451 = vrot.lane.b32.xlu0 %v3121_v52, %s3348_s29 }
0x1415   : > { %v3123_v55 = vpop.eup %3122 }
0x1416   : > { %v1445_v56 = vadd.f32 1.0, %v3123_v55 }
0x1418   : > { %1471 = vperm.xlu0 %3063, %v1469_v53   ;;  %3124 = vrcp.f32 %v1445_v56 }
0x1425   : > { %v3125_v57 = vpop.eup %3124 }
0x1426   : > { %v1449_v61 = vmul.f32 %v3125_v57, %v1365_v60 }
0x1486   : > { %v1452_v58 = vpop.permute.xlu0 %1451 }
0x1487   : > { %v1454_v59 = vmul.f32 %v3125_v57, %v1452_v58 }
0x1489   : > { %1456 = vrot.lane.b32.xlu1 %v1454_v59, %s3349_s27 }
0x1493   : > { %v1472_v1 = vpop.permute.xlu0 %1471 }
0x1494   : > { %vm1473_vm6 = vcmp.eq.s32.totalorder %v1472_v1, 1  ;;  %v3876_v1 = vld [vmem:[%s4047_s4] sm:$0xff] }
0x14fb   : > { %v1457_v62 = vpop.permute.xlu1 %1456 }
0x14fc   : > { %v1459_v63 = vadd.f32 %v1457_v62, %v1449_v61 }
0x14fe   : > { %3126 = vtanh.f32 %v1459_v63  ;;  %v1475_v31 = vsel %vm1473_vm6, %v1459_v63, %v1365_v60 }
0x150b   : > { %v3127_v0 = vpop.eup %3126 }
0x150c   : > { %1462 = vrot.lane.b32.xlu1 %v3127_v0, %s3348_s29  ;;  %v3869_v0 = vld [vmem:[%s4047_s4 + $0x8] sm:$0xff] }
0x157e   : > { %v1463_v2 = vpop.permute.xlu1 %1462 }
0x157f   : > { %v1465_v4 = vmul.f32 %v3125_v57, %v1463_v2  ;;  %v555_v2 = vadd.f32 %v3576_v22, %v3762_v16 }
0x1581   : > { %v1474_v7 = vsel %vm1473_vm6, %v1465_v4, %v1364_v45 }
0x1582   : > { %1477 = vrot.lane.b32.xlu0 %v1474_v7, %s3349_s27 }
0x15f4   : > { %v1478_v8 = vpop.permute.xlu0 %1477 }
0x15f5   : > { %2888 = vmatmul.mubr.msk.f32.vlgmr.msra.gmra.mxu0 %vm591_vm4, %v1478_v8 }
0x15f6   : > { %2902 = vmatpush3.msra.mxu0 %v3519_v5  ;;  %2909 = vmatprep.mubr.msk.f32.mxu0 %vm3346_vm2, %v3345_v3  ;;  %v545_v5 = vadd.f32 %v3576_v22, %v3758_v14 }
0x15f7   : > { %2903 = vmatprep.subr.mxu0 %v3345_v3 }
0x15f8   : > { %2904 = vmatpush3.msra.mxu0 %v3527_v6 }
0x15f9   : > { %2905 = vmatprep.subr.mxu0 %v3345_v3 }
0x15fa   : > { %2906 = vmatpush3.msra.mxu0 %v3535_v9 }
0x15fb   : > { %2907 = vmatprep.subr.mxu0 %v3345_v3 }
0x15fc   : > { %2908 = vmatpush3.msra.mxu0 %v3542_v11 }
0x15fd   : > { %2923 = vmatprep.subr.mxu0 %v3345_v3 }
0x16b5   : > { %v1547_v10 = vpop.f32.mrf.mxu0 }
0x16b6   : > { %v1551_v12 = vadd.f32 %v1547_v10, %v545_v5  ;;  %v1797_v5 = vstv %s1796_s26 }
0x16b7   : > { %v2889_v21 = vpop.f32.mrf.mxu0  ;;  %vm1798_vm11 = vcmp.lt.s32.totalorder %v1797_v5, %v3589_v32 }
0x16b8   : > { %3128 = vtanh.f32 %v1551_v12  ;;  %v2611_v25 = vmul.f32 -1.442695, %v1551_v12  ;;  %v1799_v12 = vsel %vm1798_vm11, 1, %v3347_v26 }
0x16ba   : > { %3130 = vpow2.f32 %v2611_v25 }
0x16c5   : > { %v3129_v6 = vpop.eup %3128 }
0x16c6   : > { %1561 = vrot.lane.b32.xlu1 %v3129_v6, %s3348_s29 }
0x16c7   : > { %v3131_v27 = vpop.eup %3130 }
0x16c8   : > { %v1555_v28 = vadd.f32 1.0, %v3131_v27 }
0x16ca   : > { %1581 = vperm.xlu1 %3062, %v1579_v24   ;;  %3132 = vrcp.f32 %v1555_v28 }
0x16d7   : > { %v3133_v14 = vpop.eup %3132 }
0x16d8   : > { %v1559_v33 = vmul.f32 %v3133_v14, %v1475_v31 }
0x1738   : > { %v1562_v29 = vpop.permute.xlu1 %1561 }
0x1739   : > { %v1564_v30 = vmul.f32 %v3133_v14, %v1562_v29 }
0x173b   : > { %1566 = vrot.lane.b32.xlu0 %v1564_v30, %s3349_s27 }
0x1745   : > { %v1582_v37 = vpop.permute.xlu1 %1581 }
0x1746   : > { %vm1583_vm8 = vcmp.eq.s32.totalorder %v1582_v37, 1 }
0x17ad   : > { %v1567_v34 = vpop.permute.xlu0 %1566 }
0x17ae   : > { %v1569_v35 = vadd.f32 %v1567_v34, %v1559_v33 }
0x17b0   : > { %3134 = vtanh.f32 %v1569_v35  ;;  %v1585_v54 = vsel %vm1583_vm8, %v1569_v35, %v1475_v31  ;;  %v3905_v35 = vld [vmem:[%s4048_s5] ss:$0 sm:$0xff] }
0x17bd   : > { %v3135_v36 = vpop.eup %3134 }
0x17be   : > { %1572 = vrot.lane.b32.xlu0 %v3135_v36, %s3348_s29  ;;  %v560_v36 = vadd.f32 %v3905_v35, %v3760_v15 }
0x1830   : > { %v1573_v38 = vpop.permute.xlu0 %1572 }
0x1831   : > { %v1575_v39 = vmul.f32 %v3133_v14, %v1573_v38 }
0x1833   : > { %v1584_v40 = vsel %vm1583_vm8, %v1575_v39, %v1474_v7 }
0x1834   : > { %1587 = vrot.lane.b32.xlu1 %v1584_v40, %s3349_s27 }
0x18a6   : > { %v1588_v41 = vpop.permute.xlu1 %1587 }
0x18a7   : > { %2899 = vmatmul.mubr.msk.f32.vlgmr.msra.gmra.mxu1 %vm591_vm4, %v1588_v41  ;;  %v3913_v41 = vld [vmem:[%s4044_s1] sm:$0xff] }
0x18a8   : > { %2913 = vmatpush3.msra.mxu1 %v3831_v42  ;;  %2920 = vmatprep.mubr.msk.f32.mxu1 %vm3346_vm2, %v3345_v3 }
0x18a9   : > { %2914 = vmatprep.subr.mxu1 %v3345_v3 }
0x18aa   : > { %2915 = vmatpush3.msra.mxu1 %v3840_v43 }
0x18ab   : > { %2916 = vmatprep.subr.mxu1 %v3345_v3 }
0x18ac   : > { %2917 = vmatpush3.msra.mxu1 %v3535_v9  ;;  %v1689_v9 = vsel %vm1688_vm9, 1, %v3347_v26 }
0x18ad   : > { %2918 = vmatprep.subr.mxu1 %v3345_v3 }
0x18ae   : > { %2919 = vmatpush3.msra.mxu1 %v3542_v11 }
0x18af   : > { %2934 = vmatprep.subr.mxu1 %v3345_v3 }
0x1967   : > { %v1657_v45 = vpop.f32.mrf.mxu1 }
0x1968   : > { %v1661_v46 = vadd.f32 %v1657_v45, %v550_v44 }
0x1969   : > { %v2900_v47 = vpop.f32.mrf.mxu1 }
0x196a   : > { %3136 = vtanh.f32 %v1661_v46  ;;  %v2613_v11 = vmul.f32 -1.442695, %v1661_v46 }
0x196c   : > { %3138 = vpow2.f32 %v2613_v11 }
0x1977   : > { %v3137_v49 = vpop.eup %3136 }
0x1978   : > { %1671 = vrot.lane.b32.xlu0 %v3137_v49, %s3348_s29 }
0x1979   : > { %v3139_v50 = vpop.eup %3138 }
0x197a   : > { %v1665_v51 = vadd.f32 1.0, %v3139_v50 }
0x197c   : > { %1691 = vperm.xlu0 %3063, %v1689_v9   ;;  %3140 = vrcp.f32 %v1665_v51 }
0x1989   : > { %v3141_v13 = vpop.eup %3140 }
0x198a   : > { %v1669_v55 = vmul.f32 %v3141_v13, %v1585_v54 }
0x19ea   : > { %v1672_v52 = vpop.permute.xlu0 %1671 }
0x19eb   : > { %v1674_v53 = vmul.f32 %v3141_v13, %v1672_v52 }
0x19ed   : > { %1676 = vrot.lane.b32.xlu1 %v1674_v53, %s3349_s27 }
0x19f7   : > { %v1692_v59 = vpop.permute.xlu0 %1691 }
0x19f8   : > { %vm1693_vm10 = vcmp.eq.s32.totalorder %v1692_v59, 1 }
0x1a5f   : > { %v1677_v56 = vpop.permute.xlu1 %1676 }
0x1a60   : > { %v1679_v57 = vadd.f32 %v1677_v56, %v1669_v55 }
0x1a62   : > { %3142 = vtanh.f32 %v1679_v57  ;;  %v1695_v25 = vsel %vm1693_vm10, %v1679_v57, %v1585_v54 }
0x1a6f   : > { %v3143_v58 = vpop.eup %3142 }
0x1a70   : > { %1682 = vrot.lane.b32.xlu1 %v3143_v58, %s3348_s29  ;;  %v565_v58 = vadd.f32 %v3905_v35, %v3766_v18 }
0x1ae2   : > { %v1683_v60 = vpop.permute.xlu1 %1682 }
0x1ae3   : > { %v1685_v61 = vmul.f32 %v3141_v13, %v1683_v60 }
0x1ae5   : > { %v1694_v62 = vsel %vm1693_vm10, %v1685_v61, %v1584_v40  ;;  %v1907_v40 = vstv %s1906_s23 }
0x1ae6   : > { %1697 = vrot.lane.b32.xlu0 %v1694_v62, %s3349_s27  ;;  %vm1908_vm13 = vcmp.lt.s32.totalorder %v1907_v40, %v3913_v41 }
0x1ae7   : > { %v1909_v45 = vsel %vm1908_vm13, 1, %v3347_v26 }
0x1b58   : > { %v1698_v63 = vpop.permute.xlu0 %1697 }
0x1b59   : > { %2910 = vmatmul.mubr.msk.f32.vlgmr.msra.gmra.mxu0 %vm591_vm4, %v1698_v63 }
0x1b5a   : > { %2924 = vmatpush3.msra.mxu0 %v3831_v42  ;;  %2931 = vmatprep.mubr.msk.f32.mxu0 %vm3346_vm2, %v3345_v3 }
0x1b5b   : > { %2925 = vmatprep.subr.mxu0 %v3345_v3 }
0x1b5c   : > { %2926 = vmatpush3.msra.mxu0 %v3840_v43 }
0x1b5d   : > { %2927 = vmatprep.subr.mxu0 %v3345_v3 }
0x1b5e   : > { %2928 = vmatpush3.msra.mxu0 %v3869_v0 }
0x1b5f   : > { %2929 = vmatprep.subr.mxu0 %v3345_v3 }
0x1b60   : > { %2930 = vmatpush3.msra.mxu0 %v3876_v1 }
0x1b61   : > { %2945 = vmatprep.subr.mxu0 %v3345_v3 }
0x1c19   : > { %v1767_v4 = vpop.f32.mrf.mxu0 }
0x1c1a   : > { %v1771_v7 = vadd.f32 %v1767_v4, %v555_v2 }
0x1c1b   : > { %v2911_v8 = vpop.f32.mrf.mxu0 }
0x1c1c   : > { %3144 = vtanh.f32 %v1771_v7  ;;  %v2615_v21 = vmul.f32 -1.442695, %v1771_v7 }
0x1c1e   : > { %3146 = vpow2.f32 %v2615_v21 }
0x1c29   : > { %v3145_v10 = vpop.eup %3144 }
0x1c2a   : > { %1781 = vrot.lane.b32.xlu1 %v3145_v10, %s3348_s29 }
0x1c2b   : > { %v3147_v23 = vpop.eup %3146 }
0x1c2c   : > { %v1775_v6 = vadd.f32 1.0, %v3147_v23 }
0x1c2e   : > { %1801 = vperm.xlu1 %3062, %v1799_v12   ;;  %3148 = vrcp.f32 %v1775_v6 }
0x1c3b   : > { %v3149_v22 = vpop.eup %3148 }
0x1c3c   : > { %v1779_v27 = vmul.f32 %v3149_v22, %v1695_v25 }
0x1c9c   : > { %v1782_v16 = vpop.permute.xlu1 %1781 }
0x1c9d   : > { %v1784_v24 = vmul.f32 %v3149_v22, %v1782_v16 }
0x1c9f   : > { %1786 = vrot.lane.b32.xlu0 %v1784_v24, %s3349_s27 }
0x1ca9   : > { %v1802_v29 = vpop.permute.xlu1 %1801 }
0x1caa   : > { %vm1803_vm12 = vcmp.eq.s32.totalorder %v1802_v29, 1 }
0x1d11   : > { %v1787_v32 = vpop.permute.xlu0 %1786 }
0x1d12   : > { %v1789_v28 = vadd.f32 %v1787_v32, %v1779_v27 }
0x1d14   : > { %3150 = vtanh.f32 %v1789_v28  ;;  %v1805_v11 = vsel %vm1803_vm12, %v1789_v28, %v1695_v25  ;;  %v570_v28 = vadd.f32 %v3905_v35, %v3764_v17 }
0x1d21   : > { %v3151_v14 = vpop.eup %3150 }
0x1d22   : > { %1792 = vrot.lane.b32.xlu0 %v3151_v14, %s3348_s29 }
0x1d94   : > { %v1793_v30 = vpop.permute.xlu0 %1792 }
0x1d95   : > { %v1795_v31 = vmul.f32 %v3149_v22, %v1793_v30  ;;  %v2127_v30 = vstv %s2126_s22 }
0x1d97   : > { %v1804_v33 = vsel %vm1803_vm12, %v1795_v31, %v1694_v62  ;;  %v2017_v62 = vstv %s2016_s21 }
0x1d98   : > { %1807 = vrot.lane.b32.xlu1 %v1804_v33, %s3349_s27  ;;  %vm2018_vm15 = vcmp.lt.s32.totalorder %v2017_v62, %v3913_v41 }
0x1d99   : > { %v2019_v2 = vsel %vm2018_vm15, 1, %v3347_v26 }
0x1e0a   : > { %v1808_v34 = vpop.permute.xlu1 %1807 }
0x1e0b   : > { %2921 = vmatmul.mubr.msk.f32.vlgmr.msra.gmra.mxu1 %vm591_vm4, %v1808_v34 }
0x1e0c   : > { %2935 = vmatpush3.msra.mxu1 %v3831_v42  ;;  %2942 = vmatprep.mubr.msk.f32.mxu1 %vm3346_vm2, %v3345_v3 }
0x1e0d   : > { %2936 = vmatprep.subr.mxu1 %v3345_v3 }
0x1e0e   : > { %2937 = vmatpush3.msra.mxu1 %v3840_v43 }
0x1e0f   : > { %2938 = vmatprep.subr.mxu1 %v3345_v3 }
0x1e10   : > { %2939 = vmatpush3.msra.mxu1 %v3869_v0 }
0x1e11   : > { %2940 = vmatprep.subr.mxu1 %v3345_v3 }
0x1e12   : > { %2941 = vmatpush3.msra.mxu1 %v3876_v1 }
0x1e13   : > { %2956 = vmatprep.subr.mxu1 %v3345_v3 }
0x1ecb   : > { %v1877_v37 = vpop.f32.mrf.mxu1 }
0x1ecc   : > { %v1881_v38 = vadd.f32 %v1877_v37, %v560_v36 }
0x1ecd   : > { %v2922_v39 = vpop.f32.mrf.mxu1 }
0x1ece   : > { %3152 = vtanh.f32 %v1881_v38  ;;  %v2617_v15 = vmul.f32 -1.442695, %v1881_v38 }
0x1ed0   : > { %3154 = vpow2.f32 %v2617_v15 }
0x1edb   : > { %v3153_v44 = vpop.eup %3152 }
0x1edc   : > { %1891 = vrot.lane.b32.xlu0 %v3153_v44, %s3348_s29 }
0x1edd   : > { %v3155_v46 = vpop.eup %3154 }
0x1ede   : > { %v1885_v47 = vadd.f32 1.0, %v3155_v46 }
0x1ee0   : > { %1911 = vperm.xlu0 %3063, %v1909_v45   ;;  %3156 = vrcp.f32 %v1885_v47 }
0x1eed   : > { %v3157_v48 = vpop.eup %3156 }
0x1eee   : > { %v1889_v50 = vmul.f32 %v3157_v48, %v1805_v11 }
0x1f4e   : > { %v1892_v49 = vpop.permute.xlu0 %1891 }
0x1f4f   : > { %v1894_v9 = vmul.f32 %v3157_v48, %v1892_v49 }
0x1f51   : > { %1896 = vrot.lane.b32.xlu1 %v1894_v9, %s3349_s27 }
0x1f5b   : > { %v1912_v53 = vpop.permute.xlu0 %1911 }
0x1f5c   : > { %vm1913_vm14 = vcmp.eq.s32.totalorder %v1912_v53, 1 }
0x1fc3   : > { %v1897_v51 = vpop.permute.xlu1 %1896 }
0x1fc4   : > { %v1899_v13 = vadd.f32 %v1897_v51, %v1889_v50  ;;  %v2237_v50 = vstv %s2236_s17 }
0x1fc5   : > { %vm2238_vm3 = vcmp.lt.s32.totalorder %v2237_v50, %v3913_v41 }
0x1fc6   : > { %3158 = vtanh.f32 %v1899_v13  ;;  %v1915_v12 = vsel %vm1913_vm14, %v1899_v13, %v1805_v11  ;;  %v2239_v13 = vsel %vm2238_vm3, 1, %v3347_v26 }
0x1fd3   : > { %v3159_v52 = vpop.eup %3158 }
0x1fd4   : > { %1902 = vrot.lane.b32.xlu1 %v3159_v52, %s3348_s29 }
0x2046   : > { %v1903_v54 = vpop.permute.xlu1 %1902 }
0x2047   : > { %v1905_v55 = vmul.f32 %v3157_v48, %v1903_v54  ;;  %v575_v48 = vadd.f32 %v3905_v35, %v3770_v20 }
0x2049   : > { %v1914_v56 = vsel %vm1913_vm14, %v1905_v55, %v1804_v33 }
0x204a   : > { %1917 = vrot.lane.b32.xlu0 %v1914_v56, %s3349_s27 }
0x20bc   : > { %v1918_v57 = vpop.permute.xlu0 %1917 }
0x20bd   : > { %2932 = vmatmul.mubr.msk.f32.vlgmr.msra.gmra.mxu0 %vm591_vm4, %v1918_v57 }
0x20be   : > { %2946 = vmatpush3.msra.mxu0 %v3831_v42  ;;  %2953 = vmatprep.mubr.msk.f32.mxu0 %vm3346_vm2, %v3345_v3 }
0x20bf   : > { %2947 = vmatprep.subr.mxu0 %v3345_v3 }
0x20c0   : > { %2948 = vmatpush3.msra.mxu0 %v3840_v43 }
0x20c1   : > { %2949 = vmatprep.subr.mxu0 %v3345_v3 }
0x20c2   : > { %2950 = vmatpush3.msra.mxu0 %v3869_v0 }
0x20c3   : > { %2951 = vmatprep.subr.mxu0 %v3345_v3 }
0x20c4   : > { %2952 = vmatpush3.msra.mxu0 %v3876_v1 }
0x217d   : > { %v1987_v59 = vpop.f32.mrf.mxu0 }
0x217e   : > { %v1991_v60 = vadd.f32 %v1987_v59, %v565_v58 }
0x217f   : > { %v2933_v61 = vpop.f32.mrf.mxu0 }
0x2180   : > { %3160 = vtanh.f32 %v1991_v60  ;;  %v2619_v4 = vmul.f32 -1.442695, %v1991_v60 }
0x2182   : > { %3162 = vpow2.f32 %v2619_v4 }
0x218d   : > { %v3161_v63 = vpop.eup %3160 }
0x218e   : > { %2001 = vrot.lane.b32.xlu1 %v3161_v63, %s3348_s29 }
0x218f   : > { %v3163_v7 = vpop.eup %3162 }
0x2190   : > { %v1995_v8 = vadd.f32 1.0, %v3163_v7 }
0x2192   : > { %2021 = vperm.xlu1 %3062, %v2019_v2   ;;  %3164 = vrcp.f32 %v1995_v8  ;;  %v580_v8 = vadd.f32 %v3905_v35, %v3768_v19 }
0x219f   : > { %v3165_v18 = vpop.eup %3164 }
0x21a0   : > { %v1999_v21 = vmul.f32 %v3165_v18, %v1915_v12 }
0x2200   : > { %v2002_v5 = vpop.permute.xlu1 %2001 }
0x2201   : > { %v2004_v10 = vmul.f32 %v3165_v18, %v2002_v5 }
0x2203   : > { %2006 = vrot.lane.b32.xlu0 %v2004_v10, %s3349_s27 }
0x220d   : > { %v2022_v16 = vpop.permute.xlu1 %2021 }
0x220e   : > { %vm2023_vm0 = vcmp.eq.s32.totalorder %v2022_v16, 1 }
0x2275   : > { %v2007_v23 = vpop.permute.xlu0 %2006 }
0x2276   : > { %v2009_v6 = vadd.f32 %v2007_v23, %v1999_v21 }
0x2278   : > { %3166 = vtanh.f32 %v2009_v6  ;;  %v2025_v36 = vsel %vm2023_vm0, %v2009_v6, %v1915_v12  ;;  %v2347_v12 = vstv %s2346_s24 }
0x2279   : > { %vm2348_vm6 = vcmp.lt.s32.totalorder %v2347_v12, %v3913_v41 }
0x227a   : > { %v2349_v23 = vsel %vm2348_vm6, 1, %v3347_v26 }
0x2285   : > { %v3167_v22 = vpop.eup %3166 }
0x2286   : > { %2012 = vrot.lane.b32.xlu0 %v3167_v22, %s3348_s29 }
0x22f8   : > { %v2013_v24 = vpop.permute.xlu0 %2012 }
0x22f9   : > { %v2015_v25 = vmul.f32 %v3165_v18, %v2013_v24 }
0x22fb   : > { %v2024_v27 = vsel %vm2023_vm0, %v2015_v25, %v1914_v56 }
0x22fc   : > { %2027 = vrot.lane.b32.xlu1 %v2024_v27, %s3349_s27 }
0x236e   : > { %v2028_v32 = vpop.permute.xlu1 %2027 }
0x236f   : > { %2943 = vmatmul.mubr.msk.f32.vlgmr.msra.gmra.mxu1 %vm591_vm4, %v2028_v32 }
0x2370   : > { %2957 = vmatpush3.msra.mxu1 %v3831_v42  ;;  %2964 = vmatprep.mubr.msk.f32.mxu1 %vm3346_vm2, %v3345_v3  ;;  %vm2128_vm2 = vcmp.lt.s32.totalorder %v2127_v30, %v3913_v41 }
0x2371   : > { %2958 = vmatprep.subr.mxu1 %v3345_v3 }
0x2372   : > { %2959 = vmatpush3.msra.mxu1 %v3840_v43 }
0x2373   : > { %2960 = vmatprep.subr.mxu1 %v3345_v3 }
0x2374   : > { %2961 = vmatpush3.msra.mxu1 %v3869_v0  ;;  %v2129_v0 = vsel %vm2128_vm2, 1, %v3347_v26 }
0x2375   : > { %2962 = vmatprep.subr.mxu1 %v3345_v3 }
0x2376   : > { %2963 = vmatpush3.msra.mxu1 %v3876_v1 }
0x242f   : > { %v2097_v14 = vpop.f32.mrf.mxu1 }
0x2430   : > { %v2101_v42 = vadd.f32 %v2097_v14, %v570_v28 }
0x2431   : > { %v2944_v29 = vpop.f32.mrf.mxu1 }
0x2432   : > { %3168 = vtanh.f32 %v2101_v42  ;;  %v2621_v3 = vmul.f32 -1.442695, %v2101_v42 }
0x2434   : > { %3170 = vpow2.f32 %v2621_v3 }
0x243f   : > { %v3169_v43 = vpop.eup %3168 }
0x2440   : > { %2111 = vrot.lane.b32.xlu0 %v3169_v43, %s3348_s29 }
0x2441   : > { %v3171_v1 = vpop.eup %3170 }
0x2442   : > { %v2105_v31 = vadd.f32 1.0, %v3171_v1 }
0x2444   : > { %2131 = vperm.xlu0 %3063, %v2129_v0   ;;  %3172 = vrcp.f32 %v2105_v31 }
0x2451   : > { %v3173_v17 = vpop.eup %3172 }
0x2452   : > { %v2109_v37 = vmul.f32 %v3173_v17, %v2025_v36 }
0x24b2   : > { %v2112_v33 = vpop.permute.xlu0 %2111 }
0x24b3   : > { %v2114_v34 = vmul.f32 %v3173_v17, %v2112_v33 }
0x24b5   : > { %2116 = vrot.lane.b32.xlu1 %v2114_v34, %s3349_s27 }
0x24bf   : > { %v2132_v44 = vpop.permute.xlu0 %2131 }
0x24c0   : > { %vm2133_vm1 = vcmp.eq.s32.totalorder %v2132_v44, 1 }
0x2527   : > { %v2117_v38 = vpop.permute.xlu1 %2116 }
0x2528   : > { %v2119_v39 = vadd.f32 %v2117_v38, %v2109_v37 }
0x252a   : > { %3174 = vtanh.f32 %v2119_v39  ;;  %v2135_v57 = vsel %vm2133_vm1, %v2119_v39, %v2025_v36 }
0x2537   : > { %v3175_v40 = vpop.eup %3174 }
0x2538   : > { %2122 = vrot.lane.b32.xlu1 %v3175_v40, %s3348_s29 }
0x25aa   : > { %v2123_v45 = vpop.permute.xlu1 %2122 }
0x25ab   : > { %v2125_v15 = vmul.f32 %v3173_v17, %v2123_v45 }
0x25ad   : > { %v2134_v46 = vsel %vm2133_vm1, %v2125_v15, %v2024_v27 }
0x25ae   : > { %2137 = vrot.lane.b32.xlu0 %v2134_v46, %s3349_s27 }
0x2620   : > { %v2138_v47 = vpop.permute.xlu0 %2137 }
0x2621   : > { %2954 = vmatmul.mubr.msk.f32.vlgmr.msra.gmra.mxu0 %vm591_vm4, %v2138_v47 }
0x26e1   : > { %v2207_v49 = vpop.f32.mrf.mxu0 }
0x26e2   : > { %v2211_v9 = vadd.f32 %v2207_v49, %v575_v48 }
0x26e3   : > { %v2955_v11 = vpop.f32.mrf.mxu0 }
0x26e4   : > { %3176 = vtanh.f32 %v2211_v9  ;;  %v2623_v52 = vmul.f32 -1.442695, %v2211_v9 }
0x26e6   : > { %3178 = vpow2.f32 %v2623_v52 }
0x26f1   : > { %v3177_v51 = vpop.eup %3176 }
0x26f2   : > { %2221 = vrot.lane.b32.xlu1 %v3177_v51, %s3348_s29 }
0x26f3   : > { %v3179_v53 = vpop.eup %3178 }
0x26f4   : > { %v2215_v54 = vadd.f32 1.0, %v3179_v53 }
0x26f6   : > { %2241 = vperm.xlu1 %3062, %v2239_v13   ;;  %3180 = vrcp.f32 %v2215_v54 }
0x2703   : > { %v3181_v20 = vpop.eup %3180 }
0x2704   : > { %v2219_v58 = vmul.f32 %v3181_v20, %v2135_v57 }
0x2764   : > { %v2222_v55 = vpop.permute.xlu1 %2221 }
0x2765   : > { %v2224_v56 = vmul.f32 %v3181_v20, %v2222_v55 }
0x2767   : > { %2226 = vrot.lane.b32.xlu0 %v2224_v56, %s3349_s27 }
0x2771   : > { %v2242_v62 = vpop.permute.xlu1 %2241 }
0x2772   : > { %vm2243_vm5 = vcmp.eq.s32.totalorder %v2242_v62, 1 }
0x27d9   : > { %v2227_v59 = vpop.permute.xlu0 %2226 }
0x27da   : > { %v2229_v60 = vadd.f32 %v2227_v59, %v2219_v58 }
0x27dc   : > { %3182 = vtanh.f32 %v2229_v60  ;;  %v2245_v25 = vsel %vm2243_vm5, %v2229_v60, %v2135_v57 }
0x27e9   : > { %v3183_v61 = vpop.eup %3182 }
0x27ea   : > { %2232 = vrot.lane.b32.xlu0 %v3183_v61, %s3348_s29 }
0x285c   : > { %v2233_v63 = vpop.permute.xlu0 %2232 }
0x285d   : > { %v2235_v2 = vmul.f32 %v3181_v20, %v2233_v63 }
0x285f   : > { %v2244_v4 = vsel %vm2243_vm5, %v2235_v2, %v2134_v46 }
0x2860   : > { %2247 = vrot.lane.b32.xlu1 %v2244_v4, %s3349_s27 }
0x28d2   : > { %v2248_v7 = vpop.permute.xlu1 %2247 }
0x28d3   : > { %2965 = vmatmul.mubr.msk.f32.vlgmr.msra.gmra.mxu1 %vm591_vm4, %v2248_v7 }
0x2993   : > { %v2317_v18 = vpop.f32.mrf.mxu1 }
0x2994   : > { %v2321_v5 = vadd.f32 %v2317_v18, %v580_v8 }
0x2995   : > { %v2966_v10 = vpop.f32.mrf.mxu1 }
0x2996   : > { %3184 = vtanh.f32 %v2321_v5  ;;  %v2625_v6 = vmul.f32 -1.442695, %v2321_v5 }
0x2998   : > { %3186 = vpow2.f32 %v2625_v6 }
0x29a3   : > { %v3185_v21 = vpop.eup %3184 }
0x29a4   : > { %2331 = vrot.lane.b32.xlu0 %v3185_v21, %s3348_s29 }
0x29a5   : > { %v3187_v22 = vpop.eup %3186 }
0x29a6   : > { %v2325_v16 = vadd.f32 1.0, %v3187_v22 }
0x29a8   : > { %2351 = vperm.xlu0 %3063, %v2349_v23   ;;  %3188 = vrcp.f32 %v2325_v16 }
0x29b5   : > { %v3189_v19 = vpop.eup %3188 }
0x29b6   : > { %v2329_v27 = vmul.f32 %v3189_v19, %v2245_v25 }
0x2a16   : > { %v2332_v35 = vpop.permute.xlu0 %2331 }
0x2a17   : > { %v2334_v24 = vmul.f32 %v3189_v19, %v2332_v35 }
0x2a19   : > { %2336 = vrot.lane.b32.xlu1 %v2334_v24, %s3349_s27 }
0x2a23   : > { %v2352_v14 = vpop.permute.xlu0 %2351 }
0x2a24   : > { %vm2353_vm7 = vcmp.eq.s32.totalorder %v2352_v14, 1 }
0x2a8b   : > { %v2337_v41 = vpop.permute.xlu1 %2336 }
0x2a8c   : > { %v2339_v32 = vadd.f32 %v2337_v41, %v2329_v27 }
0x2a8e   : > { %3190 = vtanh.f32 %v2339_v32  ;;  %v2355_v26 = vsel %vm2353_vm7, %v2339_v32, %v2245_v25 }
0x2a9b   : > { %v3191_v28 = vpop.eup %3190 }
0x2a9c   : > { %2342 = vrot.lane.b32.xlu1 %v3191_v28, %s3348_s29 }
0x2aa0   : > { %2362 = vrot.lane.b32.xlu1 %v2355_v26, %s3350_s14 }
0x2b0e   : > { %v2343_v42 = vpop.permute.xlu1 %2342 }
0x2b0f   : > { %v2345_v29 = vmul.f32 %v3189_v19, %v2343_v42 }
0x2b11   : > { %v2354_v30 = vsel %vm2353_vm7, %v2345_v29, %v2244_v4 }
0x2b12   : > { %2357 = vrot.lane.b32.xlu0 %v2354_v30, %s3349_s27  ;;  %v2363_v43 = vpop.permute.xlu1 %2362 }
0x2b13   : > { %2365 = vst.msk [vmem:[#allocation3] sm:$0xff] %vm591_vm4, %v2363_v43 }
0x2b84   : > { %v2358_v0 = vpop.permute.xlu0 %2357 }
0x2b85   : > { %2360 = vst.msk [vmem:[#allocation2] sm:$0xff] %vm591_vm4, %v2358_v0 }
0x2b86 PF: > { %s2626_s20 = sadd.s32 4294967295, %s3510_s0 }
0x2b87   : > { %p2627_p1 = scmp.ne.s32.totalorder %s3330_s10, %s2626_s20 }
0x2b89   : > { %2370 = sbr.rel (%p2627_p1) target bundleno = 11387 (0x2c7b), region = 68 }
0x2b8e   : > { %v2375_v3 = vld [vmem:[%s4049_s6 + $0x18] sm:$0xff]  ;;  %v3351_v1 = vmov 0.0   ;;  %v2374_v31 = vld [vmem:[%s4049_s6 + $0x10] sm:$0xff]  ;;  %vm3352_vm8 = vmmov 0   ;;  %v2373_v17 = vld [vmem:[%s4049_s6 + $0x8] sm:$0xff]  ;;  %vm2383_vm4 = vcmask 261120  }
0x2b8f   : > { %2967 = vmatprep.subr.mxu0 %v3351_v1  ;;  %2975 = vmatprep.mubr.msk.f32.mxu0 %vm3352_vm8, %v3351_v1  ;;  %v2372_v33 = vld [vmem:[%s4049_s6] sm:$0xff]  ;;  %vm2463_vm9 = vcmask 80896  }
0x2b90   : > { %2968 = vmatpush3.msra.mxu0 %v2375_v3  ;;  %v2371_v34 = vld [vmem:[#allocation2] sm:$0xff] }
0x2b91   : > { %2969 = vmatprep.subr.mxu0 %v3351_v1  ;;  %v2628_v36 = vld [vmem:[%s4050_s7] ss:$0 sm:$0xff] }
0x2b92   : > { %2970 = vmatpush3.msra.mxu0 %v2374_v31 }
0x2b93   : > { %2971 = vmatprep.subr.mxu0 %v3351_v1 }
0x2b94   : > { %2972 = vmatpush3.msra.mxu0 %v2373_v17 }
0x2b95   : > { %2973 = vmatprep.subr.mxu0 %v3351_v1 }
0x2b96   : > { %2974 = vmatpush3.msra.mxu0 %v2372_v33 }
0x2b97   : > { %2976 = vmatmul.mubr.msk.f32.vlgmr.msra.gmra.mxu0 %vm2383_vm4, %v2371_v34 }
0x2c57   : > { %v2453_v37 = vpop.f32.mrf.mxu0 }
0x2c58   : > { %v2454_v38 = vadd.f32 %v2628_v36, %v2453_v37 }
0x2c59   : > { %v2977_v39 = vpop.f32.mrf.mxu0 }
0x2c5a   : > { %v2630_v40 = vmul.f32 -1.442695, %v2454_v38 }
0x2c5c   : > { %3198 = vpow2.f32 %v2630_v40 }
0x2c69   : > { %v3199_v44 = vpop.eup %3198 }
0x2c6a   : > { %v2460_v45 = vadd.f32 1.0, %v3199_v44 }
0x2c6c   : > { %3200 = vrcp.f32 %v2460_v45 }
0x2c79   : > { %v3201_v15 = vpop.eup %3200 }
0x2c7a   : > { %2464 = vst.msk [vmem:[#allocation11] sm:$0xff] %vm2463_vm9, %v3201_v15 }
0x2c7b PF: > { %s4062_s13 = sadd.s32 4294967295, %s3338_s12   ;;  %s3353_s21 = smov [#allocation11]  }
0x2c7c   : > { %p4010_p4 = scmp.eq.s32.totalorder %s4062_s13, 1  ;;  %s2474_s22 = sshll.u32 %s3353_s21, 4  ;;  %s2475_s22 = int_to_ptr.vmem [resolvable:$true] %s2474_s22 }
0x2c7d   : > { %s3256_s17 = scalar_lea.vmem %s2475_s22, 128  ;;  %p3263_p13 = scmp.lt.s32.totalorder %s2475_s22, %s2475_s22 }
0x2c7e   : > { %p3257_p11 = scmp.ne.s32.totalorder %s2475_s22, %s3256_s17  ;;  %p3264_p0 = scmp.lt.s32.totalorder %s3256_s17, %s3256_s17 }
0x2c80   : > { %p3258_p7 = pnand %p3257_p11, %p4010_p4  ;;  %p3265_p2 = por %p3264_p0, %p3263_p13 }
0x2c82   : > { %p3259_p12 = pneg %p3258_p7 }
0x2c84   : > { %p3266_p3 = pnand %p3265_p2, %p3259_p12 }
0x2c86   : > { %3269 = shalt.err (!%p3266_p3)
}
0x2c87   : > { %2985 = dma.vmem_to_hbm [thread:$0]  (%p4010_p4), %s2475_s22, 128, %s4051_s8, [#allocation8]  }
0x2c88   : > { %3313 = dma.done.wait (%p4010_p4), [#allocation8], 128  }
0x2c89   : > { %3315 = vsyncadd (%p4010_p4), [#allocation8], 4294967168 }
0x2c8a PF: > { %s24_s12 = sadd.s32 1, %s3338_s12   ;;  %s4064_s29 = smov %s3322_s30 }
0x2c8b   : > { %p21_p6 = scmp.ge.s32.totalorder %s24_s12, 4   ;;  %s4065_s30 = smov %s3326_s9 }
0x2c8c   : > { %s4066_s9 = smov %s3481_s16  ;;  %s4067_s10 = smov %s3334_s11 }
0x2c8d   : > { %s4068_s11 = smov %s4070_s19  ;;  %23 = sbr.rel (!%p21_p6) target bundleno = 8 (0x8), region = 105 }
0x2c92   :  { %2487 = vsyncpa [#allocation7], 1 }
0x2c93   :  { %2489 = vsyncpa [#allocation7 + $0x1], 1 }
0x2c94   :  { %2490 = vsyncpa [#allocation10], 1 }
0x2c95   :  { %2491 = vsyncpa [#allocation8], 1 }
0x2c96   :  { %2493 = vsyncpa [#allocation8 + $0x1], 1 }

</bundles_post_ra>
